<compile_context>
chip_gen: v7x
topology: tpu7x:2x2x1
jax: 0.10.0
libtpu: 0.0.40
codegen_flags: <defaults>
</compile_context>

<pallas_src>
import functools

import jax
import jax.numpy as jnp
from jax.experimental import pallas as pl
from jax.experimental.pallas import tpu as pltpu

_LANE_TILE = 512  # inner length tile (lane-dense MXU / store sweet spot)


# ---------------------------------------------------------------------------
# Fused kernel: deferred-BN affine -> bf16 padded scratch -> K per-tap MXU
# matmuls (f32 acc) -> bias -> ELU -> bf16 raw activations + per-batch stats.
# Processes ONE batch element per grid step.
# ---------------------------------------------------------------------------
def _conv_elu_stats_kernel(*refs, n_in, in_meta, C_out, K, P, Lp, L_out):
    x_refs = refs[:n_in]            # per-batch input blocks (1, C_i, L_i)
    w_ref = refs[n_in]              # (K, C_out, C_total) bf16, tap-major
    p_ref = refs[n_in + 1]          # (C_out + C_total, 2) f32: [bias|0], then [scale|shift]
    y_ref = refs[n_in + 2]          # (1, C_out, L_out) bf16 raw (pre-BN) activations
    st_ref = refs[n_in + 3]         # (1, C_out, 2) f32 per-batch [sum, sumsq]
    xpad_ref = refs[n_in + 4]       # (C_total, Lp) bf16 padded/concat/affine'd scratch

    # ---- fill the bf16 padded scratch (producer's BN affine applied in f32) ----
    for i in range(n_in):
        c_lo, c_i, src, cp, row = in_meta[i]
        if cp > 0:
            sc = p_ref[row:row + c_i, 0:1]
            sh = p_ref[row:row + c_i, 1:2]
            seg = x_refs[i][0, :, src:src + cp].astype(jnp.float32)
            xpad_ref[c_lo:c_lo + c_i, P:P + cp] = (seg * sc + sh).astype(xpad_ref.dtype)
        # zero only halo pad / uncovered (crop / ceil-pad) columns
        if P > 0:
            xpad_ref[c_lo:c_lo + c_i, 0:P] = jnp.zeros((c_i, P), xpad_ref.dtype)
        if P + cp < Lp:
            xpad_ref[c_lo:c_lo + c_i, P + cp:Lp] = jnp.zeros(
                (c_i, Lp - P - cp), xpad_ref.dtype)

    # ---- conv (K accumulated per-tap matmuls) + bias + ELU + stats ----
    bias = p_ref[0:C_out, 0:1]
    s_tot = jnp.zeros((C_out, 1), jnp.float32)
    ss_tot = jnp.zeros((C_out, 1), jnp.float32)
    for off in range(0, L_out, _LANE_TILE):       # static inner length tiling
        tl = min(_LANE_TILE, L_out - off)
        acc = jnp.zeros((C_out, tl), jnp.float32)
        for k in range(K):
            acc = acc + jnp.dot(w_ref[k], xpad_ref[:, off + k:off + k + tl],
                                preferred_element_type=jnp.float32)
        acc = acc + bias
        # ELU (alpha=1); clamp exp arg so the non-selected branch stays finite.
        acc = jnp.where(acc > 0.0, acc, jnp.exp(jnp.minimum(acc, 0.0)) - 1.0)
        y_ref[0, :, off:off + tl] = acc.astype(y_ref.dtype)
        s_tot = s_tot + jnp.sum(acc, axis=1, keepdims=True)
        ss_tot = ss_tot + jnp.sum(acc * acc, axis=1, keepdims=True)

    st_ref[0, :, 0:1] = s_tot
    st_ref[0, :, 1:2] = ss_tot


def fused_conv_elu_bn_stats(xs, affines, w, bias, *, padding, logical_len):
    """Pad + Conv1d + bias + ELU over the (virtually concatenated) inputs.

    xs      : list of (N, C_i, L_i) arrays (channel concat fused in-kernel).
    affines : list of (scale_i, shift_i, src_start_i, copy_len_i) -- the
              deferred BatchNorm affine of each producer, applied while
              filling the padded scratch; logical columns outside
              [0, copy_len) stay 0 (crop / ceil-pad handling, which in torch
              happens AFTER BatchNorm, hence exact zeros).
    Returns : y_raw (N, C_out, L_out) bf16 pre-BN activations, (C_out, 2) stats.
    """
    N = int(xs[0].shape[0])
    C_total = sum(int(x.shape[1]) for x in xs)
    C_out, C_in_w, K = (int(s) for s in w.shape)
    assert C_in_w == C_total
    P = int(padding)
    Lp = int(logical_len) + 2 * P
    L_out = Lp - K + 1

    # tap-major bf16 weights: (K, C_out, C_total)
    w_taps = jnp.transpose(w, (2, 0, 1)).astype(jnp.bfloat16)

    # one packed parameter block: conv bias + per-input deferred BN affines
    rows = [jnp.stack([bias, jnp.zeros_like(bias)], axis=1)]
    in_meta = []
    c_lo, row = 0, C_out
    for x, (sc, sh, src, cp) in zip(xs, affines):
        C_i = int(x.shape[1])
        rows.append(jnp.stack([sc, sh], axis=1))
        in_meta.append((c_lo, C_i, int(src), int(cp), row))
        c_lo += C_i
        row += C_i
    p = jnp.concatenate(rows, axis=0).astype(jnp.float32)

    kernel = functools.partial(
        _conv_elu_stats_kernel, n_in=len(xs), in_meta=tuple(in_meta),
        C_out=C_out, K=K, P=P, Lp=Lp, L_out=L_out)

    in_specs = [pl.BlockSpec((1, int(x.shape[1]), int(x.shape[2])),
                             lambda n: (n, 0, 0)) for x in xs]
    in_specs += [
        pl.BlockSpec((K, C_out, C_total), lambda n: (0, 0, 0)),
        pl.BlockSpec((C_out + C_total, 2), lambda n: (0, 0)),
    ]

    y_raw, stats = pl.pallas_call(
        kernel,
        out_shape=(jax.ShapeDtypeStruct((N, C_out, L_out), jnp.bfloat16),
                   jax.ShapeDtypeStruct((N, C_out, 2), jnp.float32)),
        grid=(N,),
        in_specs=in_specs,
        out_specs=(pl.BlockSpec((1, C_out, L_out), lambda n: (n, 0, 0)),
                   pl.BlockSpec((1, C_out, 2), lambda n: (n, 0, 0))),
        scratch_shapes=[pltpu.VMEM((C_total, Lp), jnp.bfloat16)],
        compiler_params=pltpu.CompilerParams(
            dimension_semantics=("parallel",),        # batch across TCs (v7x)
            vmem_limit_bytes=32 * 1024 * 1024),
    )(*xs, w_taps, p)
    return y_raw, jnp.sum(stats, axis=0)              # tiny reduce in plain JAX


def _bn_scale_shift(stats, gamma, beta, count, eps=1e-5):
    # BatchNorm1d with batch statistics (training mode), biased variance.
    mean = stats[:, 0] / count
    var = jnp.maximum(stats[:, 1] / count - mean * mean, 0.0)
    inv = jax.lax.rsqrt(var + eps)
    scale = gamma * inv
    shift = beta - mean * scale
    return scale, shift


# ---------------------------------------------------------------------------
# Decoder forward + deterministic parameter construction
# ---------------------------------------------------------------------------
def _xavier_uniform(key, c_out, c_in, k):
    bound = jnp.sqrt(6.0 / (c_in * k + c_out * k))
    return jax.random.uniform(key, (c_out, c_in, k), jnp.float32, -bound, bound)


def init_decoder_params(key, filters, max_filters, upsample_kernel=2, kernel_size=9):
    params = {"up": [], "blk": []}
    for k in range(len(filters)):
        key, ku, kb = jax.random.split(key, 3)
        in_up = max_filters if k == 0 else filters[k - 1]
        out_ch = filters[k]
        params["up"].append(dict(
            w=_xavier_uniform(ku, out_ch, in_up, upsample_kernel),
            b=jnp.zeros((out_ch,), jnp.float32),
            g=jnp.ones((out_ch,), jnp.float32),
            beta=jnp.zeros((out_ch,), jnp.float32),
        ))
        params["blk"].append(dict(
            w=_xavier_uniform(kb, out_ch, out_ch * 2, kernel_size),
            b=jnp.zeros((out_ch,), jnp.float32),
            g=jnp.ones((out_ch,), jnp.float32),
            beta=jnp.zeros((out_ch,), jnp.float32),
        ))
    return params


def decoder_forward(z, shortcuts, params, upsample_kernel=2, kernel_size=9):
    N, C0, _ = (int(s) for s in z.shape)
    up_pad = (upsample_kernel - 1) // 2            # 0 for kernel 2
    blk_pad = (kernel_size - 1) // 2               # 4 for kernel 9

    # Carried state: raw (post-ELU, pre-BN) activation, its deferred per-channel
    # BN affine, and the number of trailing logical ceil-pad zero columns.
    z_raw = z
    z_scale = jnp.ones((C0,), jnp.float32)
    z_shift = jnp.zeros((C0,), jnp.float32)
    z_tail = 0

    for up_p, blk_p, shortcut in zip(params["up"], params["blk"], shortcuts[::-1]):
        # ---- nn.Upsample(scale=2, nearest) on the raw bf16 activation; the
        # deferred affine commutes with the repeat and the logical trailing
        # ceil-pad zero columns simply double.
        # TODO(synk): fuse this repeat into the up-conv scratch fill (needs a
        # lane-interleave store) to remove this HBM materialization per stage.
        z_rep = jnp.repeat(z_raw, upsample_kernel, axis=2)
        L_up = upsample_kernel * (int(z_raw.shape[2]) + z_tail)
        copy_len = int(z_rep.shape[2])

        # ---- ConvBNELU(kernel=upsample_kernel, ceil_pad=True); BN deferred.
        y_up, st_up = fused_conv_elu_bn_stats(
            [z_rep], [(z_scale, z_shift, 0, copy_len)],
            up_p["w"], up_p["b"], padding=up_pad, logical_len=L_up)
        L_out_up = int(y_up.shape[2])
        up_scale, up_shift = _bn_scale_shift(st_up, up_p["g"], up_p["beta"],
                                             N * L_out_up)
        L_up_f = L_out_up + (1 if (L_out_up % 2 == 1) else 0)   # after ceil pad

        # ---- CropToMatch + torch.cat([shortcut, z], 1) + ConvBNELU(kernel=9):
        # crop, ceil-pad zeros and channel concat all resolved in-kernel.
        Ls = int(shortcut.shape[2])
        Cs = int(shortcut.shape[1])
        diff = max(0, L_up_f - Ls)
        start = diff // 2 + diff % 2
        cp2 = max(0, min(Ls, L_out_up - start))
        y_blk, st_blk = fused_conv_elu_bn_stats(
            [shortcut, y_up],
            [(jnp.ones((Cs,), jnp.float32), jnp.zeros((Cs,), jnp.float32), 0, Ls),
             (up_scale, up_shift, start, cp2)],
            blk_p["w"], blk_p["b"], padding=blk_pad, logical_len=Ls)
        L_out_blk = int(y_blk.shape[2])
        z_scale, z_shift = _bn_scale_shift(st_blk, blk_p["g"], blk_p["beta"],
                                           N * L_out_blk)
        z_raw = y_blk
        z_tail = 1 if (L_out_blk % 2 == 1) else 0

    # Final deferred BatchNorm affine + ceil pad in plain JAX (XLA fuses this).
    out = z_raw.astype(jnp.float32) * z_scale[None, :, None] + z_shift[None, :, None]
    if z_tail:
        out = jnp.pad(out, ((0, 0), (0, 0), (0, z_tail)))
    return out


if __name__ == "__main__":
    key = jax.random.PRNGKey(0)
    kz, ks0, ks1, kp = jax.random.split(key, 4)

    filters = [8, 4]
    max_filters = 16
    N, L = 2, 8

    # bottleneck feature map
    z = jax.random.normal(kz, (N, max_filters, L), jnp.float32)
    # encoder shortcuts (stored shallow->deep; the decoder consumes them reversed)
    shortcuts = [
        jax.random.normal(ks1, (N, filters[1], 4 * L), jnp.float32),   # (2, 4, 32)
        jax.random.normal(ks0, (N, filters[0], 2 * L), jnp.float32),   # (2, 8, 16)
    ]

    params = init_decoder_params(kp, filters, max_filters,
                                 upsample_kernel=2, kernel_size=9)

    decoder = jax.jit(decoder_forward)
    out = jax.block_until_ready(decoder(z, shortcuts, params))

    assert out.shape == (N, filters[-1], 4 * L), out.shape
    assert bool(jnp.all(jnp.isfinite(out)))
    print("KERNEL_OK")
</pallas_src>

<mosaic_0001>
module attributes {stable_mosaic.version = 11 : i64} {
  func.func @_conv_elu_stats_kernel(%arg0: i32, %arg1: memref<1x16x16xf32, #tpu.memory_space<vmem>>, %arg2: memref<2x8x16xbf16, #tpu.memory_space<vmem>>, %arg3: memref<24x2xf32, #tpu.memory_space<vmem>>, %arg4: memref<1x8x15xbf16, #tpu.memory_space<vmem>>, %arg5: memref<1x8x2xf32, #tpu.memory_space<vmem>>, %arg6: memref<16x16xbf16, #tpu.memory_space<vmem>>) attributes {dimension_semantics = [#tpu.dimension_semantics<parallel>], iteration_bounds = array<i64: 2>, scalar_prefetch = 0 : i64, scratch_operands = 1 : i64, tpu.core_type = #tpu.core_type<tc>, window_params = [{transform_indices = @transform_0, window_bounds = array<i64: 1, 16, 16>}, {pipeline_mode = #tpu.pipeline_mode<synchronous>, transform_indices = @transform_1, window_bounds = array<i64: 2, 8, 16>}, {pipeline_mode = #tpu.pipeline_mode<synchronous>, transform_indices = @transform_2, window_bounds = array<i64: 24, 2>}, {transform_indices = @transform_3, window_bounds = array<i64: 1, 8, 15>}, {transform_indices = @transform_4, window_bounds = array<i64: 1, 8, 2>}]} {
    %c8 = arith.constant 8 : index
    %c0 = arith.constant 0 : index
    %0 = vector.load %arg3[%c8, %c0] : memref<24x2xf32, #tpu.memory_space<vmem>>, vector<16x1xf32>
    %c8_0 = arith.constant 8 : index
    %c1 = arith.constant 1 : index
    %1 = vector.load %arg3[%c8_0, %c1] : memref<24x2xf32, #tpu.memory_space<vmem>>, vector<16x1xf32>
    %c0_1 = arith.constant 0 : index
    %c0_2 = arith.constant 0 : index
    %c0_3 = arith.constant 0 : index
    %2 = vector.load %arg1[%c0_1, %c0_2, %c0_3] : memref<1x16x16xf32, #tpu.memory_space<vmem>>, vector<1x16x16xf32>
    %3 = vector.shape_cast %2 : vector<1x16x16xf32> to vector<16x16xf32>
    %4 = vector.broadcast %0 : vector<16x1xf32> to vector<16x16xf32>
    %5 = arith.mulf %3, %4 : vector<16x16xf32>
    %6 = vector.broadcast %1 : vector<16x1xf32> to vector<16x16xf32>
    %7 = arith.addf %5, %6 : vector<16x16xf32>
    %8 = arith.truncf %7 : vector<16x16xf32> to vector<16x16xbf16>
    %c0_4 = arith.constant 0 : index
    %c0_5 = arith.constant 0 : index
    %9 = vector.load %arg6[%c0_4, %c0_5] : memref<16x16xbf16, #tpu.memory_space<vmem>>, vector<16x16xbf16>
    tpu.vector_store %arg6[%c0_4, %c0_5], %8 {strides = array<i32>} : memref<16x16xbf16, #tpu.memory_space<vmem>>, vector<16x16xbf16>,
    %c0_6 = arith.constant 0 : index
    %c0_7 = arith.constant 0 : index
    %10 = vector.load %arg3[%c0_6, %c0_7] : memref<24x2xf32, #tpu.memory_space<vmem>>, vector<8x1xf32>
    %cst = arith.constant 0.000000e+00 : f32
    %11 = vector.broadcast %cst : f32 to vector<8x1xf32>
    %cst_8 = arith.constant 0.000000e+00 : f32
    %12 = vector.broadcast %cst_8 : f32 to vector<8x1xf32>
    %cst_9 = arith.constant 0.000000e+00 : f32
    %13 = vector.broadcast %cst_9 : f32 to vector<8x15xf32>
    %c0_10 = arith.constant 0 : index
    %c0_11 = arith.constant 0 : index
    %c0_12 = arith.constant 0 : index
    %14 = vector.load %arg2[%c0_10, %c0_11, %c0_12] : memref<2x8x16xbf16, #tpu.memory_space<vmem>>, vector<1x8x16xbf16>
    %15 = vector.shape_cast %14 : vector<1x8x16xbf16> to vector<8x16xbf16>
    %c0_13 = arith.constant 0 : index
    %c0_14 = arith.constant 0 : index
    %16 = vector.load %arg6[%c0_13, %c0_14] : memref<16x16xbf16, #tpu.memory_space<vmem>>, vector<16x15xbf16>
    %cst_15 = arith.constant dense<0.000000e+00> : vector<8x15xf32>
    %17 = tpu.matmul %15, %16, %cst_15 {dimension_numbers = #tpu.dot_dimension_numbers<[1], [0], [0], [1], [0, 0, 1, 1], [], []>} : vector<8x16xbf16>, vector<16x15xbf16>, vector<8x15xf32> -> vector<8x15xf32>
    %18 = arith.addf %13, %17 : vector<8x15xf32>
    %c1_16 = arith.constant 1 : index
    %c0_17 = arith.constant 0 : index
    %c0_18 = arith.constant 0 : index
    %19 = vector.load %arg2[%c1_16, %c0_17, %c0_18] : memref<2x8x16xbf16, #tpu.memory_space<vmem>>, vector<1x8x16xbf16>
    %20 = vector.shape_cast %19 : vector<1x8x16xbf16> to vector<8x16xbf16>
    %c0_19 = arith.constant 0 : index
    %c1_20 = arith.constant 1 : index
    %21 = vector.load %arg6[%c0_19, %c1_20] : memref<16x16xbf16, #tpu.memory_space<vmem>>, vector<16x15xbf16>
    %cst_21 = arith.constant dense<0.000000e+00> : vector<8x15xf32>
    %22 = tpu.matmul %20, %21, %cst_21 {dimension_numbers = #tpu.dot_dimension_numbers<[1], [0], [0], [1], [0, 0, 1, 1], [], []>} : vector<8x16xbf16>, vector<16x15xbf16>, vector<8x15xf32> -> vector<8x15xf32>
    %23 = arith.addf %18, %22 : vector<8x15xf32>
    %24 = vector.broadcast %10 : vector<8x1xf32> to vector<8x15xf32>
    %25 = arith.addf %23, %24 : vector<8x15xf32>
    %cst_22 = arith.constant 0.000000e+00 : f32
    %26 = vector.broadcast %cst_22 : f32 to vector<8x15xf32>
    %27 = arith.cmpf ogt, %25, %26 : vector<8x15xf32>
    %cst_23 = arith.constant 0.000000e+00 : f32
    %28 = vector.broadcast %cst_23 : f32 to vector<8x15xf32>
    %29 = arith.minimumf %25, %28 : vector<8x15xf32>
    %30 = math.exp %29 : vector<8x15xf32>
    %cst_24 = arith.constant 1.000000e+00 : f32
    %31 = vector.broadcast %cst_24 : f32 to vector<8x15xf32>
    %32 = arith.subf %30, %31 : vector<8x15xf32>
    %33 = arith.select %27, %25, %32 : vector<8x15xi1>, vector<8x15xf32>
    %34 = arith.truncf %33 : vector<8x15xf32> to vector<8x15xbf16>
    %c0_25 = arith.constant 0 : index
    %c0_26 = arith.constant 0 : index
    %c0_27 = arith.constant 0 : index
    %35 = vector.load %arg4[%c0_25, %c0_26, %c0_27] : memref<1x8x15xbf16, #tpu.memory_space<vmem>>, vector<1x8x15xbf16>
    %36 = vector.shape_cast %35 : vector<1x8x15xbf16> to vector<8x15xbf16>
    %37 = vector.shape_cast %34 : vector<8x15xbf16> to vector<1x8x15xbf16>
    tpu.vector_store %arg4[%c0_25, %c0_26, %c0_27], %37 {strides = array<i32>} : memref<1x8x15xbf16, #tpu.memory_space<vmem>>, vector<1x8x15xbf16>,
    %cst_28 = arith.constant dense<0.000000e+00> : vector<8xf32>
    %38 = vector.multi_reduction <add>, %33, %cst_28 [1] : vector<8x15xf32> to vector<8xf32>
    %39 = vector.shape_cast %38 : vector<8xf32> to vector<8x1xf32>
    %40 = arith.addf %11, %39 : vector<8x1xf32>
    %41 = arith.mulf %33, %33 : vector<8x15xf32>
    %cst_29 = arith.constant dense<0.000000e+00> : vector<8xf32>
    %42 = vector.multi_reduction <add>, %41, %cst_29 [1] : vector<8x15xf32> to vector<8xf32>
    %43 = vector.shape_cast %42 : vector<8xf32> to vector<8x1xf32>
    %44 = arith.addf %12, %43 : vector<8x1xf32>
    %c0_30 = arith.constant 0 : index
    %c0_31 = arith.constant 0 : index
    %c0_32 = arith.constant 0 : index
    %45 = vector.load %arg5[%c0_30, %c0_31, %c0_32] : memref<1x8x2xf32, #tpu.memory_space<vmem>>, vector<1x8x1xf32>
    %46 = vector.shape_cast %45 : vector<1x8x1xf32> to vector<8x1xf32>
    %47 = vector.shape_cast %40 : vector<8x1xf32> to vector<1x8x1xf32>
    tpu.vector_store %arg5[%c0_30, %c0_31, %c0_32], %47 {strides = array<i32>} : memref<1x8x2xf32, #tpu.memory_space<vmem>>, vector<1x8x1xf32>,
    %c0_33 = arith.constant 0 : index
    %c0_34 = arith.constant 0 : index
    %c1_35 = arith.constant 1 : index
    %48 = vector.load %arg5[%c0_33, %c0_34, %c1_35] : memref<1x8x2xf32, #tpu.memory_space<vmem>>, vector<1x8x1xf32>
    %49 = vector.shape_cast %48 : vector<1x8x1xf32> to vector<8x1xf32>
    %50 = vector.shape_cast %44 : vector<8x1xf32> to vector<1x8x1xf32>
    tpu.vector_store %arg5[%c0_33, %c0_34, %c1_35], %50 {strides = array<i32>} : memref<1x8x2xf32, #tpu.memory_space<vmem>>, vector<1x8x1xf32>,
    return
  }
  func.func @transform_0(%arg0: i32) -> (i32, i32, i32) {
    %c0_i32 = arith.constant 0 : i32
    %c0_i32_0 = arith.constant 0 : i32
    %c0_i32_1 = arith.constant 0 : i32
    return %arg0, %c0_i32, %c0_i32_0 : i32, i32, i32
  }
  func.func @transform_1(%arg0: i32) -> (i32, i32, i32) {
    %c0_i32 = arith.constant 0 : i32
    %c0_i32_0 = arith.constant 0 : i32
    %c0_i32_1 = arith.constant 0 : i32
    %c0_i32_2 = arith.constant 0 : i32
    return %c0_i32, %c0_i32_0, %c0_i32_1 : i32, i32, i32
  }
  func.func @transform_2(%arg0: i32) -> (i32, i32) {
    %c0_i32 = arith.constant 0 : i32
    %c0_i32_0 = arith.constant 0 : i32
    %c0_i32_1 = arith.constant 0 : i32
    return %c0_i32, %c0_i32_0 : i32, i32
  }
  func.func @transform_3(%arg0: i32) -> (i32, i32, i32) {
    %c0_i32 = arith.constant 0 : i32
    %c0_i32_0 = arith.constant 0 : i32
    %c0_i32_1 = arith.constant 0 : i32
    return %arg0, %c0_i32, %c0_i32_0 : i32, i32, i32
  }
  func.func @transform_4(%arg0: i32) -> (i32, i32, i32) {
    %c0_i32 = arith.constant 0 : i32
    %c0_i32_0 = arith.constant 0 : i32
    %c0_i32_1 = arith.constant 0 : i32
    return %arg0, %c0_i32, %c0_i32_0 : i32, i32, i32
  }
}

module attributes {stable_mosaic.version = 11 : i64} {
  func.func @_conv_elu_stats_kernel(%arg0: i32, %arg1: memref<1x8x16xf32, #tpu.memory_space<vmem>>, %arg2: memref<1x8x15xbf16, #tpu.memory_space<vmem>>, %arg3: memref<9x8x16xbf16, #tpu.memory_space<vmem>>, %arg4: memref<24x2xf32, #tpu.memory_space<vmem>>, %arg5: memref<1x8x16xbf16, #tpu.memory_space<vmem>>, %arg6: memref<1x8x2xf32, #tpu.memory_space<vmem>>, %arg7: memref<16x24xbf16, #tpu.memory_space<vmem>>) attributes {dimension_semantics = [#tpu.dimension_semantics<parallel>], iteration_bounds = array<i64: 2>, scalar_prefetch = 0 : i64, scratch_operands = 1 : i64, tpu.core_type = #tpu.core_type<tc>, window_params = [{transform_indices = @transform_0, window_bounds = array<i64: 1, 8, 16>}, {transform_indices = @transform_1, window_bounds = array<i64: 1, 8, 15>}, {pipeline_mode = #tpu.pipeline_mode<synchronous>, transform_indices = @transform_2, window_bounds = array<i64: 9, 8, 16>}, {pipeline_mode = #tpu.pipeline_mode<synchronous>, transform_indices = @transform_3, window_bounds = array<i64: 24, 2>}, {transform_indices = @transform_4, window_bounds = array<i64: 1, 8, 16>}, {transform_indices = @transform_5, window_bounds = array<i64: 1, 8, 2>}]} {
    %c8 = arith.constant 8 : index
    %c0 = arith.constant 0 : index
    %0 = vector.load %arg4[%c8, %c0] : memref<24x2xf32, #tpu.memory_space<vmem>>, vector<8x1xf32>
    %c8_0 = arith.constant 8 : index
    %c1 = arith.constant 1 : index
    %1 = vector.load %arg4[%c8_0, %c1] : memref<24x2xf32, #tpu.memory_space<vmem>>, vector<8x1xf32>
    %c0_1 = arith.constant 0 : index
    %c0_2 = arith.constant 0 : index
    %c0_3 = arith.constant 0 : index
    %2 = vector.load %arg1[%c0_1, %c0_2, %c0_3] : memref<1x8x16xf32, #tpu.memory_space<vmem>>, vector<1x8x16xf32>
    %3 = vector.shape_cast %2 : vector<1x8x16xf32> to vector<8x16xf32>
    %4 = vector.broadcast %0 : vector<8x1xf32> to vector<8x16xf32>
    %5 = arith.mulf %3, %4 : vector<8x16xf32>
    %6 = vector.broadcast %1 : vector<8x1xf32> to vector<8x16xf32>
    %7 = arith.addf %5, %6 : vector<8x16xf32>
    %8 = arith.truncf %7 : vector<8x16xf32> to vector<8x16xbf16>
    %c0_4 = arith.constant 0 : index
    %c4 = arith.constant 4 : index
    %9 = vector.load %arg7[%c0_4, %c4] : memref<16x24xbf16, #tpu.memory_space<vmem>>, vector<8x16xbf16>
    tpu.vector_store %arg7[%c0_4, %c4], %8 {strides = array<i32>} : memref<16x24xbf16, #tpu.memory_space<vmem>>, vector<8x16xbf16>,
    %cst = arith.constant 0.000000e+00 : bf16
    %10 = vector.broadcast %cst : bf16 to vector<8x4xbf16>
    %c0_5 = arith.constant 0 : index
    %c0_6 = arith.constant 0 : index
    %11 = vector.load %arg7[%c0_5, %c0_6] : memref<16x24xbf16, #tpu.memory_space<vmem>>, vector<8x4xbf16>
    tpu.vector_store %arg7[%c0_5, %c0_6], %10 {strides = array<i32>} : memref<16x24xbf16, #tpu.memory_space<vmem>>, vector<8x4xbf16>,
    %cst_7 = arith.constant 0.000000e+00 : bf16
    %12 = vector.broadcast %cst_7 : bf16 to vector<8x4xbf16>
    %c0_8 = arith.constant 0 : index
    %c20 = arith.constant 20 : index
    %13 = vector.load %arg7[%c0_8, %c20] : memref<16x24xbf16, #tpu.memory_space<vmem>>, vector<8x4xbf16>
    tpu.vector_store %arg7[%c0_8, %c20], %12 {strides = array<i32>} : memref<16x24xbf16, #tpu.memory_space<vmem>>, vector<8x4xbf16>,
    %c16 = arith.constant 16 : index
    %c0_9 = arith.constant 0 : index
    %14 = vector.load %arg4[%c16, %c0_9] : memref<24x2xf32, #tpu.memory_space<vmem>>, vector<8x1xf32>
    %c16_10 = arith.constant 16 : index
    %c1_11 = arith.constant 1 : index
    %15 = vector.load %arg4[%c16_10, %c1_11] : memref<24x2xf32, #tpu.memory_space<vmem>>, vector<8x1xf32>
    %c0_12 = arith.constant 0 : index
    %c0_13 = arith.constant 0 : index
    %c0_14 = arith.constant 0 : index
    %16 = vector.load %arg2[%c0_12, %c0_13, %c0_14] : memref<1x8x15xbf16, #tpu.memory_space<vmem>>, vector<1x8x15xbf16>
    %17 = vector.shape_cast %16 : vector<1x8x15xbf16> to vector<8x15xbf16>
    %18 = arith.extf %17 : vector<8x15xbf16> to vector<8x15xf32>
    %19 = vector.broadcast %14 : vector<8x1xf32> to vector<8x15xf32>
    %20 = arith.mulf %18, %19 : vector<8x15xf32>
    %21 = vector.broadcast %15 : vector<8x1xf32> to vector<8x15xf32>
    %22 = arith.addf %20, %21 : vector<8x15xf32>
    %23 = arith.truncf %22 : vector<8x15xf32> to vector<8x15xbf16>
    %c8_15 = arith.constant 8 : index
    %c4_16 = arith.constant 4 : index
    %24 = vector.load %arg7[%c8_15, %c4_16] : memref<16x24xbf16, #tpu.memory_space<vmem>>, vector<8x15xbf16>
    tpu.vector_store %arg7[%c8_15, %c4_16], %23 {strides = array<i32>} : memref<16x24xbf16, #tpu.memory_space<vmem>>, vector<8x15xbf16>,
    %cst_17 = arith.constant 0.000000e+00 : bf16
    %25 = vector.broadcast %cst_17 : bf16 to vector<8x4xbf16>
    %c8_18 = arith.constant 8 : index
    %c0_19 = arith.constant 0 : index
    %26 = vector.load %arg7[%c8_18, %c0_19] : memref<16x24xbf16, #tpu.memory_space<vmem>>, vector<8x4xbf16>
    tpu.vector_store %arg7[%c8_18, %c0_19], %25 {strides = array<i32>} : memref<16x24xbf16, #tpu.memory_space<vmem>>, vector<8x4xbf16>,
    %cst_20 = arith.constant 0.000000e+00 : bf16
    %27 = vector.broadcast %cst_20 : bf16 to vector<8x5xbf16>
    %c8_21 = arith.constant 8 : index
    %c19 = arith.constant 19 : index
    %28 = vector.load %arg7[%c8_21, %c19] : memref<16x24xbf16, #tpu.memory_space<vmem>>, vector<8x5xbf16>
    tpu.vector_store %arg7[%c8_21, %c19], %27 {strides = array<i32>} : memref<16x24xbf16, #tpu.memory_space<vmem>>, vector<8x5xbf16>,
    %c0_22 = arith.constant 0 : index
    %c0_23 = arith.constant 0 : index
    %29 = vector.load %arg4[%c0_22, %c0_23] : memref<24x2xf32, #tpu.memory_space<vmem>>, vector<8x1xf32>
    %cst_24 = arith.constant 0.000000e+00 : f32
    %30 = vector.broadcast %cst_24 : f32 to vector<8x1xf32>
    %cst_25 = arith.constant 0.000000e+00 : f32
    %31 = vector.broadcast %cst_25 : f32 to vector<8x1xf32>
    %cst_26 = arith.constant 0.000000e+00 : f32
    %32 = vector.broadcast %cst_26 : f32 to vector<8x16xf32>
    %c0_27 = arith.constant 0 : index
    %c0_28 = arith.constant 0 : index
    %c0_29 = arith.constant 0 : index
    %33 = vector.load %arg3[%c0_27, %c0_28, %c0_29] : memref<9x8x16xbf16, #tpu.memory_space<vmem>>, vector<1x8x16xbf16>
    %34 = vector.shape_cast %33 : vector<1x8x16xbf16> to vector<8x16xbf16>
    %c0_30 = arith.constant 0 : index
    %c0_31 = arith.constant 0 : index
    %35 = vector.load %arg7[%c0_30, %c0_31] : memref<16x24xbf16, #tpu.memory_space<vmem>>, vector<16x16xbf16>
    %cst_32 = arith.constant dense<0.000000e+00> : vector<8x16xf32>
    %36 = tpu.matmul %34, %35, %cst_32 {dimension_numbers = #tpu.dot_dimension_numbers<[1], [0], [0], [1], [0, 0, 1, 1], [], []>} : vector<8x16xbf16>, vector<16x16xbf16>, vector<8x16xf32> -> vector<8x16xf32>
    %37 = arith.addf %32, %36 : vector<8x16xf32>
    %c1_33 = arith.constant 1 : index
    %c0_34 = arith.constant 0 : index
    %c0_35 = arith.constant 0 : index
    %38 = vector.load %arg3[%c1_33, %c0_34, %c0_35] : memref<9x8x16xbf16, #tpu.memory_space<vmem>>, vector<1x8x16xbf16>
    %39 = vector.shape_cast %38 : vector<1x8x16xbf16> to vector<8x16xbf16>
    %c0_36 = arith.constant 0 : index
    %c1_37 = arith.constant 1 : index
    %40 = vector.load %arg7[%c0_36, %c1_37] : memref<16x24xbf16, #tpu.memory_space<vmem>>, vector<16x16xbf16>
    %cst_38 = arith.constant dense<0.000000e+00> : vector<8x16xf32>
    %41 = tpu.matmul %39, %40, %cst_38 {dimension_numbers = #tpu.dot_dimension_numbers<[1], [0], [0], [1], [0, 0, 1, 1], [], []>} : vector<8x16xbf16>, vector<16x16xbf16>, vector<8x16xf32> -> vector<8x16xf32>
    %42 = arith.addf %37, %41 : vector<8x16xf32>
    %c2 = arith.constant 2 : index
    %c0_39 = arith.constant 0 : index
    %c0_40 = arith.constant 0 : index
    %43 = vector.load %arg3[%c2, %c0_39, %c0_40] : memref<9x8x16xbf16, #tpu.memory_space<vmem>>, vector<1x8x16xbf16>
    %44 = vector.shape_cast %43 : vector<1x8x16xbf16> to vector<8x16xbf16>
    %c0_41 = arith.constant 0 : index
    %c2_42 = arith.constant 2 : index
    %45 = vector.load %arg7[%c0_41, %c2_42] : memref<16x24xbf16, #tpu.memory_space<vmem>>, vector<16x16xbf16>
    %cst_43 = arith.constant dense<0.000000e+00> : vector<8x16xf32>
    %46 = tpu.matmul %44, %45, %cst_43 {dimension_numbers = #tpu.dot_dimension_numbers<[1], [0], [0], [1], [0, 0, 1, 1], [], []>} : vector<8x16xbf16>, vector<16x16xbf16>, vector<8x16xf32> -> vector<8x16xf32>
    %47 = arith.addf %42, %46 : vector<8x16xf32>
    %c3 = arith.constant 3 : index
    %c0_44 = arith.constant 0 : index
    %c0_45 = arith.constant 0 : index
    %48 = vector.load %arg3[%c3, %c0_44, %c0_45] : memref<9x8x16xbf16, #tpu.memory_space<vmem>>, vector<1x8x16xbf16>
    %49 = vector.shape_cast %48 : vector<1x8x16xbf16> to vector<8x16xbf16>
    %c0_46 = arith.constant 0 : index
    %c3_47 = arith.constant 3 : index
    %50 = vector.load %arg7[%c0_46, %c3_47] : memref<16x24xbf16, #tpu.memory_space<vmem>>, vector<16x16xbf16>
    %cst_48 = arith.constant dense<0.000000e+00> : vector<8x16xf32>
    %51 = tpu.matmul %49, %50, %cst_48 {dimension_numbers = #tpu.dot_dimension_numbers<[1], [0], [0], [1], [0, 0, 1, 1], [], []>} : vector<8x16xbf16>, vector<16x16xbf16>, vector<8x16xf32> -> vector<8x16xf32>
    %52 = arith.addf %47, %51 : vector<8x16xf32>
    %c4_49 = arith.constant 4 : index
    %c0_50 = arith.constant 0 : index
    %c0_51 = arith.constant 0 : index
    %53 = vector.load %arg3[%c4_49, %c0_50, %c0_51] : memref<9x8x16xbf16, #tpu.memory_space<vmem>>, vector<1x8x16xbf16>
    %54 = vector.shape_cast %53 : vector<1x8x16xbf16> to vector<8x16xbf16>
    %c0_52 = arith.constant 0 : index
    %c4_53 = arith.constant 4 : index
    %55 = vector.load %arg7[%c0_52, %c4_53] : memref<16x24xbf16, #tpu.memory_space<vmem>>, vector<16x16xbf16>
    %cst_54 = arith.constant dense<0.000000e+00> : vector<8x16xf32>
    %56 = tpu.matmul %54, %55, %cst_54 {dimension_numbers = #tpu.dot_dimension_numbers<[1], [0], [0], [1], [0, 0, 1, 1], [], []>} : vector<8x16xbf16>, vector<16x16xbf16>, vector<8x16xf32> -> vector<8x16xf32>
    %57 = arith.addf %52, %56 : vector<8x16xf32>
    %c5 = arith.constant 5 : index
    %c0_55 = arith.constant 0 : index
    %c0_56 = arith.constant 0 : index
    %58 = vector.load %arg3[%c5, %c0_55, %c0_56] : memref<9x8x16xbf16, #tpu.memory_space<vmem>>, vector<1x8x16xbf16>
    %59 = vector.shape_cast %58 : vector<1x8x16xbf16> to vector<8x16xbf16>
    %c0_57 = arith.constant 0 : index
    %c5_58 = arith.constant 5 : index
    %60 = vector.load %arg7[%c0_57, %c5_58] : memref<16x24xbf16, #tpu.memory_space<vmem>>, vector<16x16xbf16>
    %cst_59 = arith.constant dense<0.000000e+00> : vector<8x16xf32>
    %61 = tpu.matmul %59, %60, %cst_59 {dimension_numbers = #tpu.dot_dimension_numbers<[1], [0], [0], [1], [0, 0, 1, 1], [], []>} : vector<8x16xbf16>, vector<16x16xbf16>, vector<8x16xf32> -> vector<8x16xf32>
    %62 = arith.addf %57, %61 : vector<8x16xf32>
    %c6 = arith.constant 6 : index
    %c0_60 = arith.constant 0 : index
    %c0_61 = arith.constant 0 : index
    %63 = vector.load %arg3[%c6, %c0_60, %c0_61] : memref<9x8x16xbf16, #tpu.memory_space<vmem>>, vector<1x8x16xbf16>
    %64 = vector.shape_cast %63 : vector<1x8x16xbf16> to vector<8x16xbf16>
    %c0_62 = arith.constant 0 : index
    %c6_63 = arith.constant 6 : index
    %65 = vector.load %arg7[%c0_62, %c6_63] : memref<16x24xbf16, #tpu.memory_space<vmem>>, vector<16x16xbf16>
    %cst_64 = arith.constant dense<0.000000e+00> : vector<8x16xf32>
    %66 = tpu.matmul %64, %65, %cst_64 {dimension_numbers = #tpu.dot_dimension_numbers<[1], [0], [0], [1], [0, 0, 1, 1], [], []>} : vector<8x16xbf16>, vector<16x16xbf16>, vector<8x16xf32> -> vector<8x16xf32>
    %67 = arith.addf %62, %66 : vector<8x16xf32>
    %c7 = arith.constant 7 : index
    %c0_65 = arith.constant 0 : index
    %c0_66 = arith.constant 0 : index
    %68 = vector.load %arg3[%c7, %c0_65, %c0_66] : memref<9x8x16xbf16, #tpu.memory_space<vmem>>, vector<1x8x16xbf16>
    %69 = vector.shape_cast %68 : vector<1x8x16xbf16> to vector<8x16xbf16>
    %c0_67 = arith.constant 0 : index
    %c7_68 = arith.constant 7 : index
    %70 = vector.load %arg7[%c0_67, %c7_68] : memref<16x24xbf16, #tpu.memory_space<vmem>>, vector<16x16xbf16>
    %cst_69 = arith.constant dense<0.000000e+00> : vector<8x16xf32>
    %71 = tpu.matmul %69, %70, %cst_69 {dimension_numbers = #tpu.dot_dimension_numbers<[1], [0], [0], [1], [0, 0, 1, 1], [], []>} : vector<8x16xbf16>, vector<16x16xbf16>, vector<8x16xf32> -> vector<8x16xf32>
    %72 = arith.addf %67, %71 : vector<8x16xf32>
    %c8_70 = arith.constant 8 : index
    %c0_71 = arith.constant 0 : index
    %c0_72 = arith.constant 0 : index
    %73 = vector.load %arg3[%c8_70, %c0_71, %c0_72] : memref<9x8x16xbf16, #tpu.memory_space<vmem>>, vector<1x8x16xbf16>
    %74 = vector.shape_cast %73 : vector<1x8x16xbf16> to vector<8x16xbf16>
    %c0_73 = arith.constant 0 : index
    %c8_74 = arith.constant 8 : index
    %75 = vector.load %arg7[%c0_73, %c8_74] : memref<16x24xbf16, #tpu.memory_space<vmem>>, vector<16x16xbf16>
    %cst_75 = arith.constant dense<0.000000e+00> : vector<8x16xf32>
    %76 = tpu.matmul %74, %75, %cst_75 {dimension_numbers = #tpu.dot_dimension_numbers<[1], [0], [0], [1], [0, 0, 1, 1], [], []>} : vector<8x16xbf16>, vector<16x16xbf16>, vector<8x16xf32> -> vector<8x16xf32>
    %77 = arith.addf %72, %76 : vector<8x16xf32>
    %78 = vector.broadcast %29 : vector<8x1xf32> to vector<8x16xf32>
    %79 = arith.addf %77, %78 : vector<8x16xf32>
    %cst_76 = arith.constant 0.000000e+00 : f32
    %80 = vector.broadcast %cst_76 : f32 to vector<8x16xf32>
    %81 = arith.cmpf ogt, %79, %80 : vector<8x16xf32>
    %cst_77 = arith.constant 0.000000e+00 : f32
    %82 = vector.broadcast %cst_77 : f32 to vector<8x16xf32>
    %83 = arith.minimumf %79, %82 : vector<8x16xf32>
    %84 = math.exp %83 : vector<8x16xf32>
    %cst_78 = arith.constant 1.000000e+00 : f32
    %85 = vector.broadcast %cst_78 : f32 to vector<8x16xf32>
    %86 = arith.subf %84, %85 : vector<8x16xf32>
    %87 = arith.select %81, %79, %86 : vector<8x16xi1>, vector<8x16xf32>
    %88 = arith.truncf %87 : vector<8x16xf32> to vector<8x16xbf16>
    %c0_79 = arith.constant 0 : index
    %c0_80 = arith.constant 0 : index
    %c0_81 = arith.constant 0 : index
    %89 = vector.load %arg5[%c0_79, %c0_80, %c0_81] : memref<1x8x16xbf16, #tpu.memory_space<vmem>>, vector<1x8x16xbf16>
    %90 = vector.shape_cast %89 : vector<1x8x16xbf16> to vector<8x16xbf16>
    %91 = vector.shape_cast %88 : vector<8x16xbf16> to vector<1x8x16xbf16>
    tpu.vector_store %arg5[%c0_79, %c0_80, %c0_81], %91 {strides = array<i32>} : memref<1x8x16xbf16, #tpu.memory_space<vmem>>, vector<1x8x16xbf16>,
    %cst_82 = arith.constant dense<0.000000e+00> : vector<8xf32>
    %92 = vector.multi_reduction <add>, %87, %cst_82 [1] : vector<8x16xf32> to vector<8xf32>
    %93 = vector.shape_cast %92 : vector<8xf32> to vector<8x1xf32>
    %94 = arith.addf %30, %93 : vector<8x1xf32>
    %95 = arith.mulf %87, %87 : vector<8x16xf32>
    %cst_83 = arith.constant dense<0.000000e+00> : vector<8xf32>
    %96 = vector.multi_reduction <add>, %95, %cst_83 [1] : vector<8x16xf32> to vector<8xf32>
    %97 = vector.shape_cast %96 : vector<8xf32> to vector<8x1xf32>
    %98 = arith.addf %31, %97 : vector<8x1xf32>
    %c0_84 = arith.constant 0 : index
    %c0_85 = arith.constant 0 : index
    %c0_86 = arith.constant 0 : index
    %99 = vector.load %arg6[%c0_84, %c0_85, %c0_86] : memref<1x8x2xf32, #tpu.memory_space<vmem>>, vector<1x8x1xf32>
    %100 = vector.shape_cast %99 : vector<1x8x1xf32> to vector<8x1xf32>
    %101 = vector.shape_cast %94 : vector<8x1xf32> to vector<1x8x1xf32>
    tpu.vector_store %arg6[%c0_84, %c0_85, %c0_86], %101 {strides = array<i32>} : memref<1x8x2xf32, #tpu.memory_space<vmem>>, vector<1x8x1xf32>,
    %c0_87 = arith.constant 0 : index
    %c0_88 = arith.constant 0 : index
    %c1_89 = arith.constant 1 : index
    %102 = vector.load %arg6[%c0_87, %c0_88, %c1_89] : memref<1x8x2xf32, #tpu.memory_space<vmem>>, vector<1x8x1xf32>
    %103 = vector.shape_cast %102 : vector<1x8x1xf32> to vector<8x1xf32>
    %104 = vector.shape_cast %98 : vector<8x1xf32> to vector<1x8x1xf32>
    tpu.vector_store %arg6[%c0_87, %c0_88, %c1_89], %104 {strides = array<i32>} : memref<1x8x2xf32, #tpu.memory_space<vmem>>, vector<1x8x1xf32>,
    return
  }
  func.func @transform_0(%arg0: i32) -> (i32, i32, i32) {
    %c0_i32 = arith.constant 0 : i32
    %c0_i32_0 = arith.constant 0 : i32
    %c0_i32_1 = arith.constant 0 : i32
    return %arg0, %c0_i32, %c0_i32_0 : i32, i32, i32
  }
  func.func @transform_1(%arg0: i32) -> (i32, i32, i32) {
    %c0_i32 = arith.constant 0 : i32
    %c0_i32_0 = arith.constant 0 : i32
    %c0_i32_1 = arith.constant 0 : i32
    return %arg0, %c0_i32, %c0_i32_0 : i32, i32, i32
  }
  func.func @transform_2(%arg0: i32) -> (i32, i32, i32) {
    %c0_i32 = arith.constant 0 : i32
    %c0_i32_0 = arith.constant 0 : i32
    %c0_i32_1 = arith.constant 0 : i32
    %c0_i32_2 = arith.constant 0 : i32
    return %c0_i32, %c0_i32_0, %c0_i32_1 : i32, i32, i32
  }
  func.func @transform_3(%arg0: i32) -> (i32, i32) {
    %c0_i32 = arith.constant 0 : i32
    %c0_i32_0 = arith.constant 0 : i32
    %c0_i32_1 = arith.constant 0 : i32
    return %c0_i32, %c0_i32_0 : i32, i32
  }
  func.func @transform_4(%arg0: i32) -> (i32, i32, i32) {
    %c0_i32 = arith.constant 0 : i32
    %c0_i32_0 = arith.constant 0 : i32
    %c0_i32_1 = arith.constant 0 : i32
    return %arg0, %c0_i32, %c0_i32_0 : i32, i32, i32
  }
  func.func @transform_5(%arg0: i32) -> (i32, i32, i32) {
    %c0_i32 = arith.constant 0 : i32
    %c0_i32_0 = arith.constant 0 : i32
    %c0_i32_1 = arith.constant 0 : i32
    return %arg0, %c0_i32, %c0_i32_0 : i32, i32, i32
  }
}

module attributes {stable_mosaic.version = 11 : i64} {
  func.func @_conv_elu_stats_kernel(%arg0: i32, %arg1: memref<1x8x32xbf16, #tpu.memory_space<vmem>>, %arg2: memref<2x4x8xbf16, #tpu.memory_space<vmem>>, %arg3: memref<12x2xf32, #tpu.memory_space<vmem>>, %arg4: memref<1x4x31xbf16, #tpu.memory_space<vmem>>, %arg5: memref<1x4x2xf32, #tpu.memory_space<vmem>>, %arg6: memref<8x32xbf16, #tpu.memory_space<vmem>>) attributes {dimension_semantics = [#tpu.dimension_semantics<parallel>], iteration_bounds = array<i64: 2>, scalar_prefetch = 0 : i64, scratch_operands = 1 : i64, tpu.core_type = #tpu.core_type<tc>, window_params = [{transform_indices = @transform_0, window_bounds = array<i64: 1, 8, 32>}, {pipeline_mode = #tpu.pipeline_mode<synchronous>, transform_indices = @transform_1, window_bounds = array<i64: 2, 4, 8>}, {pipeline_mode = #tpu.pipeline_mode<synchronous>, transform_indices = @transform_2, window_bounds = array<i64: 12, 2>}, {transform_indices = @transform_3, window_bounds = array<i64: 1, 4, 31>}, {transform_indices = @transform_4, window_bounds = array<i64: 1, 4, 2>}]} {
    %c4 = arith.constant 4 : index
    %c0 = arith.constant 0 : index
    %0 = vector.load %arg3[%c4, %c0] : memref<12x2xf32, #tpu.memory_space<vmem>>, vector<8x1xf32>
    %c4_0 = arith.constant 4 : index
    %c1 = arith.constant 1 : index
    %1 = vector.load %arg3[%c4_0, %c1] : memref<12x2xf32, #tpu.memory_space<vmem>>, vector<8x1xf32>
    %c0_1 = arith.constant 0 : index
    %c0_2 = arith.constant 0 : index
    %c0_3 = arith.constant 0 : index
    %2 = vector.load %arg1[%c0_1, %c0_2, %c0_3] : memref<1x8x32xbf16, #tpu.memory_space<vmem>>, vector<1x8x32xbf16>
    %3 = vector.shape_cast %2 : vector<1x8x32xbf16> to vector<8x32xbf16>
    %4 = arith.extf %3 : vector<8x32xbf16> to vector<8x32xf32>
    %5 = vector.broadcast %0 : vector<8x1xf32> to vector<8x32xf32>
    %6 = arith.mulf %4, %5 : vector<8x32xf32>
    %7 = vector.broadcast %1 : vector<8x1xf32> to vector<8x32xf32>
    %8 = arith.addf %6, %7 : vector<8x32xf32>
    %9 = arith.truncf %8 : vector<8x32xf32> to vector<8x32xbf16>
    %c0_4 = arith.constant 0 : index
    %c0_5 = arith.constant 0 : index
    %10 = vector.load %arg6[%c0_4, %c0_5] : memref<8x32xbf16, #tpu.memory_space<vmem>>, vector<8x32xbf16>
    tpu.vector_store %arg6[%c0_4, %c0_5], %9 {strides = array<i32>} : memref<8x32xbf16, #tpu.memory_space<vmem>>, vector<8x32xbf16>,
    %c0_6 = arith.constant 0 : index
    %c0_7 = arith.constant 0 : index
    %11 = vector.load %arg3[%c0_6, %c0_7] : memref<12x2xf32, #tpu.memory_space<vmem>>, vector<4x1xf32>
    %cst = arith.constant 0.000000e+00 : f32
    %12 = vector.broadcast %cst : f32 to vector<4x1xf32>
    %cst_8 = arith.constant 0.000000e+00 : f32
    %13 = vector.broadcast %cst_8 : f32 to vector<4x1xf32>
    %cst_9 = arith.constant 0.000000e+00 : f32
    %14 = vector.broadcast %cst_9 : f32 to vector<4x31xf32>
    %c0_10 = arith.constant 0 : index
    %c0_11 = arith.constant 0 : index
    %c0_12 = arith.constant 0 : index
    %15 = vector.load %arg2[%c0_10, %c0_11, %c0_12] : memref<2x4x8xbf16, #tpu.memory_space<vmem>>, vector<1x4x8xbf16>
    %16 = vector.shape_cast %15 : vector<1x4x8xbf16> to vector<4x8xbf16>
    %c0_13 = arith.constant 0 : index
    %c0_14 = arith.constant 0 : index
    %17 = vector.load %arg6[%c0_13, %c0_14] : memref<8x32xbf16, #tpu.memory_space<vmem>>, vector<8x31xbf16>
    %cst_15 = arith.constant dense<0.000000e+00> : vector<4x31xf32>
    %18 = tpu.matmul %16, %17, %cst_15 {dimension_numbers = #tpu.dot_dimension_numbers<[1], [0], [0], [1], [0, 0, 1, 1], [], []>} : vector<4x8xbf16>, vector<8x31xbf16>, vector<4x31xf32> -> vector<4x31xf32>
    %19 = arith.addf %14, %18 : vector<4x31xf32>
    %c1_16 = arith.constant 1 : index
    %c0_17 = arith.constant 0 : index
    %c0_18 = arith.constant 0 : index
    %20 = vector.load %arg2[%c1_16, %c0_17, %c0_18] : memref<2x4x8xbf16, #tpu.memory_space<vmem>>, vector<1x4x8xbf16>
    %21 = vector.shape_cast %20 : vector<1x4x8xbf16> to vector<4x8xbf16>
    %c0_19 = arith.constant 0 : index
    %c1_20 = arith.constant 1 : index
    %22 = vector.load %arg6[%c0_19, %c1_20] : memref<8x32xbf16, #tpu.memory_space<vmem>>, vector<8x31xbf16>
    %cst_21 = arith.constant dense<0.000000e+00> : vector<4x31xf32>
    %23 = tpu.matmul %21, %22, %cst_21 {dimension_numbers = #tpu.dot_dimension_numbers<[1], [0], [0], [1], [0, 0, 1, 1], [], []>} : vector<4x8xbf16>, vector<8x31xbf16>, vector<4x31xf32> -> vector<4x31xf32>
    %24 = arith.addf %19, %23 : vector<4x31xf32>
    %25 = vector.broadcast %11 : vector<4x1xf32> to vector<4x31xf32>
    %26 = arith.addf %24, %25 : vector<4x31xf32>
    %cst_22 = arith.constant 0.000000e+00 : f32
    %27 = vector.broadcast %cst_22 : f32 to vector<4x31xf32>
    %28 = arith.cmpf ogt, %26, %27 : vector<4x31xf32>
    %cst_23 = arith.constant 0.000000e+00 : f32
    %29 = vector.broadcast %cst_23 : f32 to vector<4x31xf32>
    %30 = arith.minimumf %26, %29 : vector<4x31xf32>
    %31 = math.exp %30 : vector<4x31xf32>
    %cst_24 = arith.constant 1.000000e+00 : f32
    %32 = vector.broadcast %cst_24 : f32 to vector<4x31xf32>
    %33 = arith.subf %31, %32 : vector<4x31xf32>
    %34 = arith.select %28, %26, %33 : vector<4x31xi1>, vector<4x31xf32>
    %35 = arith.truncf %34 : vector<4x31xf32> to vector<4x31xbf16>
    %c0_25 = arith.constant 0 : index
    %c0_26 = arith.constant 0 : index
    %c0_27 = arith.constant 0 : index
    %36 = vector.load %arg4[%c0_25, %c0_26, %c0_27] : memref<1x4x31xbf16, #tpu.memory_space<vmem>>, vector<1x4x31xbf16>
    %37 = vector.shape_cast %36 : vector<1x4x31xbf16> to vector<4x31xbf16>
    %38 = vector.shape_cast %35 : vector<4x31xbf16> to vector<1x4x31xbf16>
    tpu.vector_store %arg4[%c0_25, %c0_26, %c0_27], %38 {strides = array<i32>} : memref<1x4x31xbf16, #tpu.memory_space<vmem>>, vector<1x4x31xbf16>,
    %cst_28 = arith.constant dense<0.000000e+00> : vector<4xf32>
    %39 = vector.multi_reduction <add>, %34, %cst_28 [1] : vector<4x31xf32> to vector<4xf32>
    %40 = vector.shape_cast %39 : vector<4xf32> to vector<4x1xf32>
    %41 = arith.addf %12, %40 : vector<4x1xf32>
    %42 = arith.mulf %34, %34 : vector<4x31xf32>
    %cst_29 = arith.constant dense<0.000000e+00> : vector<4xf32>
    %43 = vector.multi_reduction <add>, %42, %cst_29 [1] : vector<4x31xf32> to vector<4xf32>
    %44 = vector.shape_cast %43 : vector<4xf32> to vector<4x1xf32>
    %45 = arith.addf %13, %44 : vector<4x1xf32>
    %c0_30 = arith.constant 0 : index
    %c0_31 = arith.constant 0 : index
    %c0_32 = arith.constant 0 : index
    %46 = vector.load %arg5[%c0_30, %c0_31, %c0_32] : memref<1x4x2xf32, #tpu.memory_space<vmem>>, vector<1x4x1xf32>
    %47 = vector.shape_cast %46 : vector<1x4x1xf32> to vector<4x1xf32>
    %48 = vector.shape_cast %41 : vector<4x1xf32> to vector<1x4x1xf32>
    tpu.vector_store %arg5[%c0_30, %c0_31, %c0_32], %48 {strides = array<i32>} : memref<1x4x2xf32, #tpu.memory_space<vmem>>, vector<1x4x1xf32>,
    %c0_33 = arith.constant 0 : index
    %c0_34 = arith.constant 0 : index
    %c1_35 = arith.constant 1 : index
    %49 = vector.load %arg5[%c0_33, %c0_34, %c1_35] : memref<1x4x2xf32, #tpu.memory_space<vmem>>, vector<1x4x1xf32>
    %50 = vector.shape_cast %49 : vector<1x4x1xf32> to vector<4x1xf32>
    %51 = vector.shape_cast %45 : vector<4x1xf32> to vector<1x4x1xf32>
    tpu.vector_store %arg5[%c0_33, %c0_34, %c1_35], %51 {strides = array<i32>} : memref<1x4x2xf32, #tpu.memory_space<vmem>>, vector<1x4x1xf32>,
    return
  }
  func.func @transform_0(%arg0: i32) -> (i32, i32, i32) {
    %c0_i32 = arith.constant 0 : i32
    %c0_i32_0 = arith.constant 0 : i32
    %c0_i32_1 = arith.constant 0 : i32
    return %arg0, %c0_i32, %c0_i32_0 : i32, i32, i32
  }
  func.func @transform_1(%arg0: i32) -> (i32, i32, i32) {
    %c0_i32 = arith.constant 0 : i32
    %c0_i32_0 = arith.constant 0 : i32
    %c0_i32_1 = arith.constant 0 : i32
    %c0_i32_2 = arith.constant 0 : i32
    return %c0_i32, %c0_i32_0, %c0_i32_1 : i32, i32, i32
  }
  func.func @transform_2(%arg0: i32) -> (i32, i32) {
    %c0_i32 = arith.constant 0 : i32
    %c0_i32_0 = arith.constant 0 : i32
    %c0_i32_1 = arith.constant 0 : i32
    return %c0_i32, %c0_i32_0 : i32, i32
  }
  func.func @transform_3(%arg0: i32) -> (i32, i32, i32) {
    %c0_i32 = arith.constant 0 : i32
    %c0_i32_0 = arith.constant 0 : i32
    %c0_i32_1 = arith.constant 0 : i32
    return %arg0, %c0_i32, %c0_i32_0 : i32, i32, i32
  }
  func.func @transform_4(%arg0: i32) -> (i32, i32, i32) {
    %c0_i32 = arith.constant 0 : i32
    %c0_i32_0 = arith.constant 0 : i32
    %c0_i32_1 = arith.constant 0 : i32
    return %arg0, %c0_i32, %c0_i32_0 : i32, i32, i32
  }
}

module attributes {stable_mosaic.version = 11 : i64} {
  func.func @_conv_elu_stats_kernel(%arg0: i32, %arg1: memref<1x4x32xf32, #tpu.memory_space<vmem>>, %arg2: memref<1x4x31xbf16, #tpu.memory_space<vmem>>, %arg3: memref<9x4x8xbf16, #tpu.memory_space<vmem>>, %arg4: memref<12x2xf32, #tpu.memory_space<vmem>>, %arg5: memref<1x4x32xbf16, #tpu.memory_space<vmem>>, %arg6: memref<1x4x2xf32, #tpu.memory_space<vmem>>, %arg7: memref<8x40xbf16, #tpu.memory_space<vmem>>) attributes {dimension_semantics = [#tpu.dimension_semantics<parallel>], iteration_bounds = array<i64: 2>, scalar_prefetch = 0 : i64, scratch_operands = 1 : i64, tpu.core_type = #tpu.core_type<tc>, window_params = [{transform_indices = @transform_0, window_bounds = array<i64: 1, 4, 32>}, {transform_indices = @transform_1, window_bounds = array<i64: 1, 4, 31>}, {pipeline_mode = #tpu.pipeline_mode<synchronous>, transform_indices = @transform_2, window_bounds = array<i64: 9, 4, 8>}, {pipeline_mode = #tpu.pipeline_mode<synchronous>, transform_indices = @transform_3, window_bounds = array<i64: 12, 2>}, {transform_indices = @transform_4, window_bounds = array<i64: 1, 4, 32>}, {transform_indices = @transform_5, window_bounds = array<i64: 1, 4, 2>}]} {
    %c4 = arith.constant 4 : index
    %c0 = arith.constant 0 : index
    %0 = vector.load %arg4[%c4, %c0] : memref<12x2xf32, #tpu.memory_space<vmem>>, vector<4x1xf32>
    %c4_0 = arith.constant 4 : index
    %c1 = arith.constant 1 : index
    %1 = vector.load %arg4[%c4_0, %c1] : memref<12x2xf32, #tpu.memory_space<vmem>>, vector<4x1xf32>
    %c0_1 = arith.constant 0 : index
    %c0_2 = arith.constant 0 : index
    %c0_3 = arith.constant 0 : index
    %2 = vector.load %arg1[%c0_1, %c0_2, %c0_3] : memref<1x4x32xf32, #tpu.memory_space<vmem>>, vector<1x4x32xf32>
    %3 = vector.shape_cast %2 : vector<1x4x32xf32> to vector<4x32xf32>
    %4 = vector.broadcast %0 : vector<4x1xf32> to vector<4x32xf32>
    %5 = arith.mulf %3, %4 : vector<4x32xf32>
    %6 = vector.broadcast %1 : vector<4x1xf32> to vector<4x32xf32>
    %7 = arith.addf %5, %6 : vector<4x32xf32>
    %8 = arith.truncf %7 : vector<4x32xf32> to vector<4x32xbf16>
    %c0_4 = arith.constant 0 : index
    %c4_5 = arith.constant 4 : index
    %9 = vector.load %arg7[%c0_4, %c4_5] : memref<8x40xbf16, #tpu.memory_space<vmem>>, vector<4x32xbf16>
    tpu.vector_store %arg7[%c0_4, %c4_5], %8 {strides = array<i32>} : memref<8x40xbf16, #tpu.memory_space<vmem>>, vector<4x32xbf16>,
    %cst = arith.constant 0.000000e+00 : bf16
    %10 = vector.broadcast %cst : bf16 to vector<4x4xbf16>
    %c0_6 = arith.constant 0 : index
    %c0_7 = arith.constant 0 : index
    %11 = vector.load %arg7[%c0_6, %c0_7] : memref<8x40xbf16, #tpu.memory_space<vmem>>, vector<4x4xbf16>
    tpu.vector_store %arg7[%c0_6, %c0_7], %10 {strides = array<i32>} : memref<8x40xbf16, #tpu.memory_space<vmem>>, vector<4x4xbf16>,
    %cst_8 = arith.constant 0.000000e+00 : bf16
    %12 = vector.broadcast %cst_8 : bf16 to vector<4x4xbf16>
    %c0_9 = arith.constant 0 : index
    %c36 = arith.constant 36 : index
    %13 = vector.load %arg7[%c0_9, %c36] : memref<8x40xbf16, #tpu.memory_space<vmem>>, vector<4x4xbf16>
    tpu.vector_store %arg7[%c0_9, %c36], %12 {strides = array<i32>} : memref<8x40xbf16, #tpu.memory_space<vmem>>, vector<4x4xbf16>,
    %c8 = arith.constant 8 : index
    %c0_10 = arith.constant 0 : index
    %14 = vector.load %arg4[%c8, %c0_10] : memref<12x2xf32, #tpu.memory_space<vmem>>, vector<4x1xf32>
    %c8_11 = arith.constant 8 : index
    %c1_12 = arith.constant 1 : index
    %15 = vector.load %arg4[%c8_11, %c1_12] : memref<12x2xf32, #tpu.memory_space<vmem>>, vector<4x1xf32>
    %c0_13 = arith.constant 0 : index
    %c0_14 = arith.constant 0 : index
    %c0_15 = arith.constant 0 : index
    %16 = vector.load %arg2[%c0_13, %c0_14, %c0_15] : memref<1x4x31xbf16, #tpu.memory_space<vmem>>, vector<1x4x31xbf16>
    %17 = vector.shape_cast %16 : vector<1x4x31xbf16> to vector<4x31xbf16>
    %18 = arith.extf %17 : vector<4x31xbf16> to vector<4x31xf32>
    %19 = vector.broadcast %14 : vector<4x1xf32> to vector<4x31xf32>
    %20 = arith.mulf %18, %19 : vector<4x31xf32>
    %21 = vector.broadcast %15 : vector<4x1xf32> to vector<4x31xf32>
    %22 = arith.addf %20, %21 : vector<4x31xf32>
    %23 = arith.truncf %22 : vector<4x31xf32> to vector<4x31xbf16>
    %c4_16 = arith.constant 4 : index
    %c4_17 = arith.constant 4 : index
    %24 = vector.load %arg7[%c4_16, %c4_17] : memref<8x40xbf16, #tpu.memory_space<vmem>>, vector<4x31xbf16>
    tpu.vector_store %arg7[%c4_16, %c4_17], %23 {strides = array<i32>} : memref<8x40xbf16, #tpu.memory_space<vmem>>, vector<4x31xbf16>,
    %cst_18 = arith.constant 0.000000e+00 : bf16
    %25 = vector.broadcast %cst_18 : bf16 to vector<4x4xbf16>
    %c4_19 = arith.constant 4 : index
    %c0_20 = arith.constant 0 : index
    %26 = vector.load %arg7[%c4_19, %c0_20] : memref<8x40xbf16, #tpu.memory_space<vmem>>, vector<4x4xbf16>
    tpu.vector_store %arg7[%c4_19, %c0_20], %25 {strides = array<i32>} : memref<8x40xbf16, #tpu.memory_space<vmem>>, vector<4x4xbf16>,
    %cst_21 = arith.constant 0.000000e+00 : bf16
    %27 = vector.broadcast %cst_21 : bf16 to vector<4x5xbf16>
    %c4_22 = arith.constant 4 : index
    %c35 = arith.constant 35 : index
    %28 = vector.load %arg7[%c4_22, %c35] : memref<8x40xbf16, #tpu.memory_space<vmem>>, vector<4x5xbf16>
    tpu.vector_store %arg7[%c4_22, %c35], %27 {strides = array<i32>} : memref<8x40xbf16, #tpu.memory_space<vmem>>, vector<4x5xbf16>,
    %c0_23 = arith.constant 0 : index
    %c0_24 = arith.constant 0 : index
    %29 = vector.load %arg4[%c0_23, %c0_24] : memref<12x2xf32, #tpu.memory_space<vmem>>, vector<4x1xf32>
    %cst_25 = arith.constant 0.000000e+00 : f32
    %30 = vector.broadcast %cst_25 : f32 to vector<4x1xf32>
    %cst_26 = arith.constant 0.000000e+00 : f32
    %31 = vector.broadcast %cst_26 : f32 to vector<4x1xf32>
    %cst_27 = arith.constant 0.000000e+00 : f32
    %32 = vector.broadcast %cst_27 : f32 to vector<4x32xf32>
    %c0_28 = arith.constant 0 : index
    %c0_29 = arith.constant 0 : index
    %c0_30 = arith.constant 0 : index
    %33 = vector.load %arg3[%c0_28, %c0_29, %c0_30] : memref<9x4x8xbf16, #tpu.memory_space<vmem>>, vector<1x4x8xbf16>
    %34 = vector.shape_cast %33 : vector<1x4x8xbf16> to vector<4x8xbf16>
    %c0_31 = arith.constant 0 : index
    %c0_32 = arith.constant 0 : index
    %35 = vector.load %arg7[%c0_31, %c0_32] : memref<8x40xbf16, #tpu.memory_space<vmem>>, vector<8x32xbf16>
    %cst_33 = arith.constant dense<0.000000e+00> : vector<4x32xf32>
    %36 = tpu.matmul %34, %35, %cst_33 {dimension_numbers = #tpu.dot_dimension_numbers<[1], [0], [0], [1], [0, 0, 1, 1], [], []>} : vector<4x8xbf16>, vector<8x32xbf16>, vector<4x32xf32> -> vector<4x32xf32>
    %37 = arith.addf %32, %36 : vector<4x32xf32>
    %c1_34 = arith.constant 1 : index
    %c0_35 = arith.constant 0 : index
    %c0_36 = arith.constant 0 : index
    %38 = vector.load %arg3[%c1_34, %c0_35, %c0_36] : memref<9x4x8xbf16, #tpu.memory_space<vmem>>, vector<1x4x8xbf16>
    %39 = vector.shape_cast %38 : vector<1x4x8xbf16> to vector<4x8xbf16>
    %c0_37 = arith.constant 0 : index
    %c1_38 = arith.constant 1 : index
    %40 = vector.load %arg7[%c0_37, %c1_38] : memref<8x40xbf16, #tpu.memory_space<vmem>>, vector<8x32xbf16>
    %cst_39 = arith.constant dense<0.000000e+00> : vector<4x32xf32>
    %41 = tpu.matmul %39, %40, %cst_39 {dimension_numbers = #tpu.dot_dimension_numbers<[1], [0], [0], [1], [0, 0, 1, 1], [], []>} : vector<4x8xbf16>, vector<8x32xbf16>, vector<4x32xf32> -> vector<4x32xf32>
    %42 = arith.addf %37, %41 : vector<4x32xf32>
    %c2 = arith.constant 2 : index
    %c0_40 = arith.constant 0 : index
    %c0_41 = arith.constant 0 : index
    %43 = vector.load %arg3[%c2, %c0_40, %c0_41] : memref<9x4x8xbf16, #tpu.memory_space<vmem>>, vector<1x4x8xbf16>
    %44 = vector.shape_cast %43 : vector<1x4x8xbf16> to vector<4x8xbf16>
    %c0_42 = arith.constant 0 : index
    %c2_43 = arith.constant 2 : index
    %45 = vector.load %arg7[%c0_42, %c2_43] : memref<8x40xbf16, #tpu.memory_space<vmem>>, vector<8x32xbf16>
    %cst_44 = arith.constant dense<0.000000e+00> : vector<4x32xf32>
    %46 = tpu.matmul %44, %45, %cst_44 {dimension_numbers = #tpu.dot_dimension_numbers<[1], [0], [0], [1], [0, 0, 1, 1], [], []>} : vector<4x8xbf16>, vector<8x32xbf16>, vector<4x32xf32> -> vector<4x32xf32>
    %47 = arith.addf %42, %46 : vector<4x32xf32>
    %c3 = arith.constant 3 : index
    %c0_45 = arith.constant 0 : index
    %c0_46 = arith.constant 0 : index
    %48 = vector.load %arg3[%c3, %c0_45, %c0_46] : memref<9x4x8xbf16, #tpu.memory_space<vmem>>, vector<1x4x8xbf16>
    %49 = vector.shape_cast %48 : vector<1x4x8xbf16> to vector<4x8xbf16>
    %c0_47 = arith.constant 0 : index
    %c3_48 = arith.constant 3 : index
    %50 = vector.load %arg7[%c0_47, %c3_48] : memref<8x40xbf16, #tpu.memory_space<vmem>>, vector<8x32xbf16>
    %cst_49 = arith.constant dense<0.000000e+00> : vector<4x32xf32>
    %51 = tpu.matmul %49, %50, %cst_49 {dimension_numbers = #tpu.dot_dimension_numbers<[1], [0], [0], [1], [0, 0, 1, 1], [], []>} : vector<4x8xbf16>, vector<8x32xbf16>, vector<4x32xf32> -> vector<4x32xf32>
    %52 = arith.addf %47, %51 : vector<4x32xf32>
    %c4_50 = arith.constant 4 : index
    %c0_51 = arith.constant 0 : index
    %c0_52 = arith.constant 0 : index
    %53 = vector.load %arg3[%c4_50, %c0_51, %c0_52] : memref<9x4x8xbf16, #tpu.memory_space<vmem>>, vector<1x4x8xbf16>
    %54 = vector.shape_cast %53 : vector<1x4x8xbf16> to vector<4x8xbf16>
    %c0_53 = arith.constant 0 : index
    %c4_54 = arith.constant 4 : index
    %55 = vector.load %arg7[%c0_53, %c4_54] : memref<8x40xbf16, #tpu.memory_space<vmem>>, vector<8x32xbf16>
    %cst_55 = arith.constant dense<0.000000e+00> : vector<4x32xf32>
    %56 = tpu.matmul %54, %55, %cst_55 {dimension_numbers = #tpu.dot_dimension_numbers<[1], [0], [0], [1], [0, 0, 1, 1], [], []>} : vector<4x8xbf16>, vector<8x32xbf16>, vector<4x32xf32> -> vector<4x32xf32>
    %57 = arith.addf %52, %56 : vector<4x32xf32>
    %c5 = arith.constant 5 : index
    %c0_56 = arith.constant 0 : index
    %c0_57 = arith.constant 0 : index
    %58 = vector.load %arg3[%c5, %c0_56, %c0_57] : memref<9x4x8xbf16, #tpu.memory_space<vmem>>, vector<1x4x8xbf16>
    %59 = vector.shape_cast %58 : vector<1x4x8xbf16> to vector<4x8xbf16>
    %c0_58 = arith.constant 0 : index
    %c5_59 = arith.constant 5 : index
    %60 = vector.load %arg7[%c0_58, %c5_59] : memref<8x40xbf16, #tpu.memory_space<vmem>>, vector<8x32xbf16>
    %cst_60 = arith.constant dense<0.000000e+00> : vector<4x32xf32>
    %61 = tpu.matmul %59, %60, %cst_60 {dimension_numbers = #tpu.dot_dimension_numbers<[1], [0], [0], [1], [0, 0, 1, 1], [], []>} : vector<4x8xbf16>, vector<8x32xbf16>, vector<4x32xf32> -> vector<4x32xf32>
    %62 = arith.addf %57, %61 : vector<4x32xf32>
    %c6 = arith.constant 6 : index
    %c0_61 = arith.constant 0 : index
    %c0_62 = arith.constant 0 : index
    %63 = vector.load %arg3[%c6, %c0_61, %c0_62] : memref<9x4x8xbf16, #tpu.memory_space<vmem>>, vector<1x4x8xbf16>
    %64 = vector.shape_cast %63 : vector<1x4x8xbf16> to vector<4x8xbf16>
    %c0_63 = arith.constant 0 : index
    %c6_64 = arith.constant 6 : index
    %65 = vector.load %arg7[%c0_63, %c6_64] : memref<8x40xbf16, #tpu.memory_space<vmem>>, vector<8x32xbf16>
    %cst_65 = arith.constant dense<0.000000e+00> : vector<4x32xf32>
    %66 = tpu.matmul %64, %65, %cst_65 {dimension_numbers = #tpu.dot_dimension_numbers<[1], [0], [0], [1], [0, 0, 1, 1], [], []>} : vector<4x8xbf16>, vector<8x32xbf16>, vector<4x32xf32> -> vector<4x32xf32>
    %67 = arith.addf %62, %66 : vector<4x32xf32>
    %c7 = arith.constant 7 : index
    %c0_66 = arith.constant 0 : index
    %c0_67 = arith.constant 0 : index
    %68 = vector.load %arg3[%c7, %c0_66, %c0_67] : memref<9x4x8xbf16, #tpu.memory_space<vmem>>, vector<1x4x8xbf16>
    %69 = vector.shape_cast %68 : vector<1x4x8xbf16> to vector<4x8xbf16>
    %c0_68 = arith.constant 0 : index
    %c7_69 = arith.constant 7 : index
    %70 = vector.load %arg7[%c0_68, %c7_69] : memref<8x40xbf16, #tpu.memory_space<vmem>>, vector<8x32xbf16>
    %cst_70 = arith.constant dense<0.000000e+00> : vector<4x32xf32>
    %71 = tpu.matmul %69, %70, %cst_70 {dimension_numbers = #tpu.dot_dimension_numbers<[1], [0], [0], [1], [0, 0, 1, 1], [], []>} : vector<4x8xbf16>, vector<8x32xbf16>, vector<4x32xf32> -> vector<4x32xf32>
    %72 = arith.addf %67, %71 : vector<4x32xf32>
    %c8_71 = arith.constant 8 : index
    %c0_72 = arith.constant 0 : index
    %c0_73 = arith.constant 0 : index
    %73 = vector.load %arg3[%c8_71, %c0_72, %c0_73] : memref<9x4x8xbf16, #tpu.memory_space<vmem>>, vector<1x4x8xbf16>
    %74 = vector.shape_cast %73 : vector<1x4x8xbf16> to vector<4x8xbf16>
    %c0_74 = arith.constant 0 : index
    %c8_75 = arith.constant 8 : index
    %75 = vector.load %arg7[%c0_74, %c8_75] : memref<8x40xbf16, #tpu.memory_space<vmem>>, vector<8x32xbf16>
    %cst_76 = arith.constant dense<0.000000e+00> : vector<4x32xf32>
    %76 = tpu.matmul %74, %75, %cst_76 {dimension_numbers = #tpu.dot_dimension_numbers<[1], [0], [0], [1], [0, 0, 1, 1], [], []>} : vector<4x8xbf16>, vector<8x32xbf16>, vector<4x32xf32> -> vector<4x32xf32>
    %77 = arith.addf %72, %76 : vector<4x32xf32>
    %78 = vector.broadcast %29 : vector<4x1xf32> to vector<4x32xf32>
    %79 = arith.addf %77, %78 : vector<4x32xf32>
    %cst_77 = arith.constant 0.000000e+00 : f32
    %80 = vector.broadcast %cst_77 : f32 to vector<4x32xf32>
    %81 = arith.cmpf ogt, %79, %80 : vector<4x32xf32>
    %cst_78 = arith.constant 0.000000e+00 : f32
    %82 = vector.broadcast %cst_78 : f32 to vector<4x32xf32>
    %83 = arith.minimumf %79, %82 : vector<4x32xf32>
    %84 = math.exp %83 : vector<4x32xf32>
    %cst_79 = arith.constant 1.000000e+00 : f32
    %85 = vector.broadcast %cst_79 : f32 to vector<4x32xf32>
    %86 = arith.subf %84, %85 : vector<4x32xf32>
    %87 = arith.select %81, %79, %86 : vector<4x32xi1>, vector<4x32xf32>
    %88 = arith.truncf %87 : vector<4x32xf32> to vector<4x32xbf16>
    %c0_80 = arith.constant 0 : index
    %c0_81 = arith.constant 0 : index
    %c0_82 = arith.constant 0 : index
    %89 = vector.load %arg5[%c0_80, %c0_81, %c0_82] : memref<1x4x32xbf16, #tpu.memory_space<vmem>>, vector<1x4x32xbf16>
    %90 = vector.shape_cast %89 : vector<1x4x32xbf16> to vector<4x32xbf16>
    %91 = vector.shape_cast %88 : vector<4x32xbf16> to vector<1x4x32xbf16>
    tpu.vector_store %arg5[%c0_80, %c0_81, %c0_82], %91 {strides = array<i32>} : memref<1x4x32xbf16, #tpu.memory_space<vmem>>, vector<1x4x32xbf16>,
    %cst_83 = arith.constant dense<0.000000e+00> : vector<4xf32>
    %92 = vector.multi_reduction <add>, %87, %cst_83 [1] : vector<4x32xf32> to vector<4xf32>
    %93 = vector.shape_cast %92 : vector<4xf32> to vector<4x1xf32>
    %94 = arith.addf %30, %93 : vector<4x1xf32>
    %95 = arith.mulf %87, %87 : vector<4x32xf32>
    %cst_84 = arith.constant dense<0.000000e+00> : vector<4xf32>
    %96 = vector.multi_reduction <add>, %95, %cst_84 [1] : vector<4x32xf32> to vector<4xf32>
    %97 = vector.shape_cast %96 : vector<4xf32> to vector<4x1xf32>
    %98 = arith.addf %31, %97 : vector<4x1xf32>
    %c0_85 = arith.constant 0 : index
    %c0_86 = arith.constant 0 : index
    %c0_87 = arith.constant 0 : index
    %99 = vector.load %arg6[%c0_85, %c0_86, %c0_87] : memref<1x4x2xf32, #tpu.memory_space<vmem>>, vector<1x4x1xf32>
    %100 = vector.shape_cast %99 : vector<1x4x1xf32> to vector<4x1xf32>
    %101 = vector.shape_cast %94 : vector<4x1xf32> to vector<1x4x1xf32>
    tpu.vector_store %arg6[%c0_85, %c0_86, %c0_87], %101 {strides = array<i32>} : memref<1x4x2xf32, #tpu.memory_space<vmem>>, vector<1x4x1xf32>,
    %c0_88 = arith.constant 0 : index
    %c0_89 = arith.constant 0 : index
    %c1_90 = arith.constant 1 : index
    %102 = vector.load %arg6[%c0_88, %c0_89, %c1_90] : memref<1x4x2xf32, #tpu.memory_space<vmem>>, vector<1x4x1xf32>
    %103 = vector.shape_cast %102 : vector<1x4x1xf32> to vector<4x1xf32>
    %104 = vector.shape_cast %98 : vector<4x1xf32> to vector<1x4x1xf32>
    tpu.vector_store %arg6[%c0_88, %c0_89, %c1_90], %104 {strides = array<i32>} : memref<1x4x2xf32, #tpu.memory_space<vmem>>, vector<1x4x1xf32>,
    return
  }
  func.func @transform_0(%arg0: i32) -> (i32, i32, i32) {
    %c0_i32 = arith.constant 0 : i32
    %c0_i32_0 = arith.constant 0 : i32
    %c0_i32_1 = arith.constant 0 : i32
    return %arg0, %c0_i32, %c0_i32_0 : i32, i32, i32
  }
  func.func @transform_1(%arg0: i32) -> (i32, i32, i32) {
    %c0_i32 = arith.constant 0 : i32
    %c0_i32_0 = arith.constant 0 : i32
    %c0_i32_1 = arith.constant 0 : i32
    return %arg0, %c0_i32, %c0_i32_0 : i32, i32, i32
  }
  func.func @transform_2(%arg0: i32) -> (i32, i32, i32) {
    %c0_i32 = arith.constant 0 : i32
    %c0_i32_0 = arith.constant 0 : i32
    %c0_i32_1 = arith.constant 0 : i32
    %c0_i32_2 = arith.constant 0 : i32
    return %c0_i32, %c0_i32_0, %c0_i32_1 : i32, i32, i32
  }
  func.func @transform_3(%arg0: i32) -> (i32, i32) {
    %c0_i32 = arith.constant 0 : i32
    %c0_i32_0 = arith.constant 0 : i32
    %c0_i32_1 = arith.constant 0 : i32
    return %c0_i32, %c0_i32_0 : i32, i32
  }
  func.func @transform_4(%arg0: i32) -> (i32, i32, i32) {
    %c0_i32 = arith.constant 0 : i32
    %c0_i32_0 = arith.constant 0 : i32
    %c0_i32_1 = arith.constant 0 : i32
    return %arg0, %c0_i32, %c0_i32_0 : i32, i32, i32
  }
  func.func @transform_5(%arg0: i32) -> (i32, i32, i32) {
    %c0_i32 = arith.constant 0 : i32
    %c0_i32_0 = arith.constant 0 : i32
    %c0_i32_1 = arith.constant 0 : i32
    return %arg0, %c0_i32, %c0_i32_0 : i32, i32, i32
  }
}

</mosaic_0001>

<bundles_post_ra>
// kernel: decoder_forward.6
= control target key start
LH: loop header
LB: loop body
LE: loop exit
PB: predicated region body
PF: predicated region fallthrough
CT: control target
= control target key end

     0   :  { %s528_s15 = smov 0   ;;  %s568_s0 = inlined_call_operand.vmem [shape: bf16[2,8,32], index: 0, kind: input, shape index: {}]   ;;  %s569_s1 = inlined_call_operand.vmem [shape: bf16[2,4,8], index: 1, kind: input, shape index: {}]   ;;  %s570_s2 = inlined_call_operand.vmem [shape: f32[12,2], index: 2, kind: input, shape index: {}]   ;;  %s571_s3 = inlined_call_operand.vmem [shape: bf16[2,4,31], index: 3, kind: output, shape index: {0}]   ;;  %s572_s4 = inlined_call_operand.vmem [shape: f32[2,4,2], index: 4, kind: output, shape index: {1}]  }
   0x1 LB: > { %s439_s16 = sadd.s32 4294967295, %s496_s15   ;;  %p443_p0 = scmp.ge.s32.totalorder %s496_s15, 1  ;;  %s496_s15 = sphi %s528_s15, %s15_s15  }
   0x2   : > { %p164_p1 = scmp.lt.s32.totalorder %s496_s15, 3 }
   0x4   : > { %p165_p2 = pnand %p443_p0, %p164_p1 }
   0x5   : > { %v205_v0 = vld [vmem:[%s570_s2 + $0x4] sm:$0xff] (!%p165_p2)  ;;  %v498_v1 = vmov (!%p165_p2), 0   ;;  %v499_v2 = vmov (!%p165_p2), 1   ;;  %v500_v3 = vmov (!%p165_p2), 0.0   ;;  %p192_p3 = scmp.lt.s32.totalorder (!%p165_p2), %s439_s16, 1  ;;  %vm220_vm0 = vcmask (!%p165_p2), 257024  }
   0x6   : > { %168 = sbr.rel (%p165_p2) target bundleno = 653 (0x28d), region = 32  ;;  %483 = vset.pattern.permute.xlu0 (!%p165_p2), %v498_v1  ;;  %485 = vset.pattern.permute.xlu1 (!%p165_p2), %v498_v1  ;;  %vm501_vm1 = vmmov (!%p165_p2), 0   ;;  %vm236_vm2 = vcmask (!%p165_p2), 1043456   ;;  %v223_v14 = vld [vmem:[%s569_s1] sm:$0x3] (!%p165_p2)  ;;  %vm232_vm3 = vcmask (!%p165_p2), 64512  }
   0x7   : > { %210 = vperm.xlu0 (!%p165_p2), %483, %v205_v0   ;;  %464 = vmatprep.subr.bf16.mxu1 (!%p165_p2), %v500_v3  ;;  %s502_s25 = smov (!%p165_p2), 127   ;;  %v222_v15 = vld [vmem:[%s570_s2] sm:$0xf] (!%p165_p2)  ;;  %vm341_vm4 = vcmask (!%p165_p2), 248832   ;;  %vm339_vm6 = vcmask (!%p165_p2), 246784   ;;  %vm351_vm7 = vcmask (!%p165_p2), 3072  }
   0x8   : > { %458 = vmatprep.subr.bf16.mxu0 (!%p165_p2), %v500_v3  ;;  %466 = vmatprep.mubr.msk.bf16.mxu1 (!%p165_p2), %vm501_vm1, %v500_v3  ;;  %v447_v18 = vld [vmem:[%s569_s1 + $0x2] sm:$0x3] (!%p165_p2)  ;;  %vm353_vm8 = vcmask (!%p165_p2), 11272  }
   0x9   : > { %460 = vmatprep.mubr.msk.bf16.mxu0 (!%p165_p2), %vm501_vm1, %v500_v3 }
   0xb   : > { %484 = vset.pattern.permute.xlu0 (!%p165_p2), %v499_v2 }
   0xc   : > { %215 = vperm.xlu0 (!%p165_p2), %484, %v205_v0  }
   0xd   : > { %s574_s16 = smov (!%p192_p3, %s439_s16), 1 }
   0xe   : > { %s444_s19 = sshll.u32 %s574_s16, 2  ;;  %s445_s30 = sshll.u32 %s574_s16, 1 }
   0xf   : > { %s195_s22 = scalar_lea.vmem %s568_s0, %s444_s19  ;;  %s199_s7 = scalar_lea.vmem %s571_s3, %s445_s30 }
  0x10   : > { %486 = vset.pattern.permute.xlu0 %v498_v1  ;;  %v206_v4 = vld [vmem:[%s195_s22] sm:$0xf]  ;;  %s203_s10 = scalar_lea.vmem %s572_s4, %s444_s19 }
  0x11   : > { %v207_v6 = vunpack.c.l.bf16 %v206_v4 }
  0x86   : > { %v211_v5 = vpop.permute.xlu0 %210 }
  0x87   : > { %v213_v7 = vmul.f32 %v211_v5, %v207_v6 }
  0x8b   : > { %v216_v8 = vpop.permute.xlu0 %215 }
  0x8c   : > { %v218_v9 = vadd.f32 %v216_v8, %v213_v7 }
  0x8e   : > { %v219_v10 = vpack.c.bf16 %v218_v9, %v218_v9 }
  0x90   : > { %221 = vst.msk [vmem:[#allocation2] sm:$0xf] %vm220_vm0, %v219_v10 }
  0x97   : > { %v224_v11 = vld [vmem:[#allocation2] sm:$0xf] }
  0x98   : > { %v284_v12 = vsel %vm236_vm2, %v224_v11, 0  ;;  %v448_v13 = vcombine.low %v224_v11, %v224_v11 }
  0x99   : > { %465 = vmatpush3.bf16.msra.mxu1 %v284_v12 }
  0x9a   : > { %230 = vrot.lane.b32.xlu1 %v448_v13, %s502_s25 }
  0x9c   : > { %467 = vmatmul.mubr.msk.bf16.vlgmr.msra.gmra.mrb[0].mxu1 %vm232_vm3, %v223_v14 }
  0x9e   : > { %328 = vperm.xlu1 %485, %v222_v15  }
 0x10c   : > { %v231_v16 = vpop.permute.xlu1 %230 }
 0x10d   : > { %v238_v17 = vsel %vm236_vm2, %v231_v16, 0 }
 0x10e   : > { %459 = vmatpush3.bf16.msra.mxu0 %v238_v17 }
 0x111   : > { %461 = vmatmul.mubr.msk.bf16.vlgmr.msra.gmra.mrb[0].mxu0 %vm232_vm3, %v447_v18 }
 0x11d   : > { %v329_v24 = vpop.permute.xlu1 %328 }
 0x16f   : > { %v320_v19 = vpop.f32.mrb[0].mxu1 }
 0x170   : > { %v468_v20 = vpop.f32.mrb[1].mxu1 }
 0x171   : > { %v323_v21 = vpop.f32.mrb[2].mxu1 }
 0x172   : > { %v469_v22 = vpop.f32.mrb[3].mxu1 }
 0x1e4   : > { %v274_v23 = vpop.f32.mrb[0].mxu0 }
 0x1e5   : > { %v321_v25 = vadd.f32 %v320_v19, %v274_v23  ;;  %v462_v26 = vpop.f32.mrb[1].mxu0 }
 0x1e6   : > { %v277_v27 = vpop.f32.mrb[2].mxu0 }
 0x1e7   : > { %v331_v28 = vadd.f32 %v329_v24, %v321_v25  ;;  %v463_v29 = vpop.f32.mrb[3].mxu0 }
 0x1e9   : > { %v333_v30 = vmin.f32 %v331_v28, 0.0  ;;  %vm332_vm5 = vcmp.gt.f32.partialorder %v331_v28, 0.0 }
 0x1eb   : > { %v334_v31 = vmul.f32 1.442695, %v333_v30 }
 0x1ed   : > { %488 = vpow2.f32 %v334_v31 }
 0x1f7   : > { %v489_v32 = vpop.eup %488 }
 0x1f8   : > { %v451_v33 = vadd.f32 -1.0, %v489_v32 }
 0x1fa   : > { %v337_v34 = vsel %vm332_vm5, %v331_v28, %v451_v33 }
 0x1fb   : > { %v342_v35 = vsel %vm341_vm4, %v337_v34, 0.0  ;;  %v338_v36 = vpack.c.bf16 %v337_v34, %v337_v34  ;;  %v346_v37 = vmul.f32 %v337_v34, %v337_v34 }
 0x1fc   : > { %343 = vadd.xlane.f32.xlu1 %v342_v35 }
 0x1fd   : > { %340 = vst.msk [vmem:[%s199_s7] sm:$0x3] %vm339_vm6, %v338_v36  ;;  %v347_v38 = vsel %vm341_vm4, %v346_v37, 0.0 }
 0x1fe   : > { %348 = vadd.xlane.f32.xlu0 %v347_v38 }
 0x289   : > { %v344_v39 = vpop.xlane.xlu1 %343 }
 0x28a   : > { %352 = vst.msk [vmem:[%s203_s10] sm:$0xf] %vm351_vm7, %v344_v39 }
 0x28b   : > { %v349_v40 = vpop.xlane.xlu0 %348 }
 0x28c   : > { %354 = vst.msk [vmem:[%s203_s10] sm:$0xf] %vm353_vm8, %v349_v40 }
 0x28d PF: > { %s15_s15 = sadd.s32 1, %s496_s15  }
 0x28e   : > { %p12_p4 = scmp.ge.s32.totalorder %s15_s15, 4  }
 0x290   :  { %14 = sbr.rel (!%p12_p4) target bundleno = 1 (0x1), region = 75 }

// kernel: decoder_forward.4
= control target key start
LH: loop header
LB: loop body
LE: loop exit
PB: predicated region body
PF: predicated region fallthrough
CT: control target
= control target key end

     0   :  { %s533_s15 = smov 0   ;;  %s573_s0 = inlined_call_operand.vmem [shape: f32[2,16,16], index: 0, kind: input, shape index: {}]   ;;  %s574_s1 = inlined_call_operand.vmem [shape: bf16[2,8,16], index: 1, kind: input, shape index: {}]   ;;  %s575_s2 = inlined_call_operand.vmem [shape: f32[24,2], index: 2, kind: input, shape index: {}]   ;;  %s576_s3 = inlined_call_operand.vmem [shape: bf16[2,8,15], index: 3, kind: output, shape index: {0}]   ;;  %s577_s4 = inlined_call_operand.vmem [shape: f32[2,8,2], index: 4, kind: output, shape index: {1}]  }
   0x1 LB: > { %s445_s16 = sadd.s32 4294967295, %s501_s15   ;;  %p449_p0 = scmp.ge.s32.totalorder %s501_s15, 1  ;;  %s501_s15 = sphi %s533_s15, %s15_s15  }
   0x2   : > { %p165_p1 = scmp.lt.s32.totalorder %s501_s15, 3 }
   0x4   : > { %p166_p2 = pnand %p449_p0, %p165_p1 }
   0x5   : > { %v208_v0 = vld [vmem:[%s575_s2 + $0x8] sm:$0xff] (!%p166_p2)  ;;  %v503_v1 = vmov (!%p166_p2), 1   ;;  %v504_v2 = vmov (!%p166_p2), 0   ;;  %v209_v3 = vld [vmem:[%s575_s2 + $0x10] sm:$0xff] (!%p166_p2)  ;;  %v505_v4 = vmov (!%p166_p2), 0.0   ;;  %vm506_vm0 = vmmov (!%p166_p2), 0  }
   0x6   : > { %169 = sbr.rel (%p166_p2) target bundleno = 651 (0x28b), region = 32  ;;  %491 = vset.pattern.permute.xlu1 (!%p166_p2), %v503_v1  ;;  %490 = vset.pattern.permute.xlu0 (!%p166_p2), %v504_v2  ;;  %p194_p3 = scmp.lt.s32.totalorder (!%p166_p2), %s445_s16, 1  ;;  %vm235_vm1 = vcmask (!%p166_p2), 130048   ;;  %v237_v16 = vld [vmem:[%s575_s2] sm:$0xff] (!%p166_p2)  ;;  %vm347_vm2 = vcmask (!%p166_p2), 121856   ;;  %vm345_vm4 = vcmask (!%p166_p2), 117760  }
   0x7   : > { %225 = vperm.xlu1 (!%p166_p2), %491, %v208_v0   ;;  %214 = vperm.xlu0 (!%p166_p2), %490, %v208_v0   ;;  %s507_s27 = smov (!%p166_p2), 127   ;;  %v238_v18 = vld [vmem:[%s574_s1] sm:$0xf] (!%p166_p2)  ;;  %v454_v20 = vld [vmem:[%s574_s1 + $0x4] sm:$0xf] (!%p166_p2)  ;;  %vm357_vm5 = vcmask (!%p166_p2), 7168  }
   0x8   : > { %471 = vmatprep.subr.bf16.mxu1 (!%p166_p2), %v505_v4  ;;  %465 = vmatprep.subr.bf16.mxu0 (!%p166_p2), %v505_v4  ;;  %vm359_vm6 = vcmask (!%p166_p2), 15368  }
   0x9   : > { %473 = vmatprep.mubr.msk.bf16.mxu1 (!%p166_p2), %vm506_vm0, %v505_v4  ;;  %467 = vmatprep.mubr.msk.bf16.mxu0 (!%p166_p2), %vm506_vm0, %v505_v4 }
   0xb   : > { %229 = vperm.xlu1 (!%p166_p2), %491, %v209_v3   ;;  %219 = vperm.xlu0 (!%p166_p2), %490, %v209_v3  }
   0xd   : > { %s579_s16 = smov (!%p194_p3, %s445_s16), 1 }
   0xe   : > { %s460_s21 = sshll.u32 %s579_s16, 4  ;;  %s452_s6 = sshll.u32 %s579_s16, 2 }
   0xf   : > { %492 = vset.pattern.permute.xlu1 %v504_v2  ;;  %s198_s24 = scalar_lea.vmem %s573_s0, %s460_s21  ;;  %s202_s9 = scalar_lea.vmem %s576_s3, %s452_s6 }
  0x10   : > { %v210_v7 = vld [vmem:[%s198_s24] sm:$0xff]  ;;  %v211_v8 = vld [vmem:[%s198_s24 + $0x8] sm:$0xff]  ;;  %334 = vperm.xlu1 %492, %v237_v16   ;;  %s453_s10 = sshll.u32 %s579_s16, 3 }
  0x11   : > { %s206_s13 = scalar_lea.vmem %s577_s4, %s453_s10 }
  0x86   : > { %v226_v5 = vpop.permute.xlu1 %225  ;;  %v215_v6 = vpop.permute.xlu0 %214 }
  0x87   : > { %v222_v9 = vmul.f32 %v215_v6, %v210_v7 }
  0x89   : > { %v232_v13 = vadd.f32 %v226_v5, %v222_v9 }
  0x8a   : > { %v220_v10 = vpop.permute.xlu0 %219  ;;  %v230_v12 = vpop.permute.xlu1 %229 }
  0x8b   : > { %v223_v11 = vmul.f32 %v220_v10, %v211_v8 }
  0x8d   : > { %v233_v14 = vadd.f32 %v230_v12, %v223_v11 }
  0x8f   : > { %v234_v15 = vpack.c.bf16 %v233_v14, %v232_v13  ;;  %v335_v26 = vpop.permute.xlu1 %334 }
  0x91   : > { %236 = vst.msk [vmem:[#allocation2] sm:$0xff] %vm235_vm1, %v234_v15 }
  0x98   : > { %v239_v17 = vld [vmem:[#allocation2] sm:$0xff] }
  0x99   : > { %243 = vrot.lane.b32.xlu0 %v239_v17, %s507_s27  ;;  %472 = vmatpush3.bf16.msra.mxu1 %v239_v17 }
  0x9c   : > { %474 = vmatmul.mubr.msk.bf16.vlgmr.msra.gmra.mrb[0].mxu1 %vm235_vm1, %v238_v18 }
 0x10b   : > { %v244_v19 = vpop.permute.xlu0 %243 }
 0x10c   : > { %466 = vmatpush3.bf16.msra.mxu0 %v244_v19 }
 0x10f   : > { %468 = vmatmul.mubr.msk.bf16.vlgmr.msra.gmra.mrb[0].mxu0 %vm235_vm1, %v454_v20 }
 0x16f   : > { %v326_v21 = vpop.f32.mrb[0].mxu1 }
 0x170   : > { %v475_v22 = vpop.f32.mrb[1].mxu1 }
 0x171   : > { %v329_v23 = vpop.f32.mrb[2].mxu1 }
 0x172   : > { %v476_v24 = vpop.f32.mrb[3].mxu1 }
 0x1e2   : > { %v283_v25 = vpop.f32.mrb[0].mxu0 }
 0x1e3   : > { %v327_v27 = vadd.f32 %v326_v21, %v283_v25  ;;  %v469_v28 = vpop.f32.mrb[1].mxu0 }
 0x1e4   : > { %v286_v29 = vpop.f32.mrb[2].mxu0 }
 0x1e5   : > { %v337_v30 = vadd.f32 %v335_v26, %v327_v27  ;;  %v470_v31 = vpop.f32.mrb[3].mxu0 }
 0x1e7   : > { %v339_v32 = vmin.f32 %v337_v30, 0.0  ;;  %vm338_vm3 = vcmp.gt.f32.partialorder %v337_v30, 0.0 }
 0x1e9   : > { %v340_v33 = vmul.f32 1.442695, %v339_v32 }
 0x1eb   : > { %493 = vpow2.f32 %v340_v33 }
 0x1f5   : > { %v494_v34 = vpop.eup %493 }
 0x1f6   : > { %v457_v35 = vadd.f32 -1.0, %v494_v34 }
 0x1f8   : > { %v343_v36 = vsel %vm338_vm3, %v337_v30, %v457_v35 }
 0x1f9   : > { %v348_v37 = vsel %vm347_vm2, %v343_v36, 0.0  ;;  %v344_v38 = vpack.c.bf16 %v343_v36, %v343_v36  ;;  %v352_v39 = vmul.f32 %v343_v36, %v343_v36 }
 0x1fa   : > { %349 = vadd.xlane.f32.xlu0 %v348_v37 }
 0x1fb   : > { %346 = vst.msk [vmem:[%s202_s9] sm:$0xf] %vm345_vm4, %v344_v38  ;;  %v353_v40 = vsel %vm347_vm2, %v352_v39, 0.0 }
 0x1fc   : > { %354 = vadd.xlane.f32.xlu1 %v353_v40 }
 0x287   : > { %v350_v41 = vpop.xlane.xlu0 %349 }
 0x288   : > { %358 = vst.msk [vmem:[%s206_s13] sm:$0xff] %vm357_vm5, %v350_v41 }
 0x289   : > { %v355_v42 = vpop.xlane.xlu1 %354 }
 0x28a   : > { %360 = vst.msk [vmem:[%s206_s13] sm:$0xff] %vm359_vm6, %v355_v42 }
 0x28b PF: > { %s15_s15 = sadd.s32 1, %s501_s15  }
 0x28c   : > { %p12_p4 = scmp.ge.s32.totalorder %s15_s15, 4  }
 0x28e   :  { %14 = sbr.rel (!%p12_p4) target bundleno = 1 (0x1), region = 75 }

// kernel: decoder_forward.5
= control target key start
LH: loop header
LB: loop body
LE: loop exit
PB: predicated region body
PF: predicated region fallthrough
CT: control target
= control target key end

     0   :  { %s1039_s18 = smov 0   ;;  %s1148_s0 = inlined_call_operand.vmem [shape: f32[2,8,16], index: 0, kind: input, shape index: {}]   ;;  %s1149_s1 = inlined_call_operand.vmem [shape: bf16[2,8,15], index: 1, kind: input, shape index: {}]   ;;  %s1150_s2 = inlined_call_operand.vmem [shape: bf16[9,8,16], index: 2, kind: input, shape index: {}]   ;;  %s1151_s3 = inlined_call_operand.vmem [shape: f32[24,2], index: 3, kind: input, shape index: {}]   ;;  %s1152_s4 = inlined_call_operand.vmem [shape: bf16[2,8,16], index: 4, kind: output, shape index: {0}]   ;;  %s1153_s5 = inlined_call_operand.vmem [shape: f32[2,8,2], index: 5, kind: output, shape index: {1}]  }
   0x1 LB: > { %s862_s19 = sadd.s32 4294967295, %s994_s18   ;;  %p866_p0 = scmp.ge.s32.totalorder %s994_s18, 1  ;;  %s994_s18 = sphi %s1039_s18, %s16_s18  }
   0x2   : > { %p198_p1 = scmp.lt.s32.totalorder %s994_s18, 3 }
   0x4   : > { %p199_p2 = pnand %p866_p0, %p198_p1 }
   0x5   : > { %v273_v0 = vld [vmem:[%s1151_s3 + $0x10] sm:$0xff] (!%p199_p2)  ;;  %v996_v1 = vmov (!%p199_p2), 1   ;;  %v997_v2 = vmov (!%p199_p2), 0   ;;  %v249_v3 = vld [vmem:[%s1151_s3 + $0x8] sm:$0xff] (!%p199_p2)  ;;  %p232_p3 = scmp.lt.s32.totalorder (!%p199_p2), %s862_s19, 1  ;;  %s998_s7 = smov (!%p199_p2), 4  }
   0x6   : > { %202 = sbr.rel (%p199_p2) target bundleno = 801 (0x321), region = 36  ;;  %985 = vset.pattern.permute.xlu1 (!%p199_p2), %v996_v1  ;;  %984 = vset.pattern.permute.xlu0 (!%p199_p2), %v997_v2  ;;  %v999_v18 = vmov (!%p199_p2), 0.0   ;;  %vm293_vm0 = vcmask (!%p199_p2), 154660   ;;  %vm295_vm1 = vcmask (!%p199_p2), 31748   ;;  %vm297_vm2 = vcmask (!%p199_p2), 195740   ;;  %s1001_s8 = smov (!%p199_p2), 127  }
   0x7   : > { %283 = vperm.xlu1 (!%p199_p2), %985, %v273_v0   ;;  %278 = vperm.xlu0 (!%p199_p2), %984, %v273_v0   ;;  %vm267_vm3 = vcmask (!%p199_p2), 158752   ;;  %vm269_vm4 = vcmask (!%p199_p2), 27648   ;;  %vm1000_vm5 = vmmov (!%p199_p2), 0   ;;  %vm271_vm6 = vcmask (!%p199_p2), 191648   ;;  %s1002_s9 = smov (!%p199_p2), 126   ;;  %s1003_s12 = smov (!%p199_p2), 125  }
   0x8   : > { %909 = vmatprep.subr.bf16.mxu0 (!%p199_p2), %v999_v18  ;;  %915 = vmatprep.subr.bf16.mxu1 (!%p199_p2), %v999_v18  ;;  %vm308_vm7 = vcmask (!%p199_p2), 130048   ;;  %v300_v22 = vld [vmem:[%s1150_s2] sm:$0xf] (!%p199_p2)  ;;  %s1004_s13 = smov (!%p199_p2), 124   ;;  %s1005_s14 = smov (!%p199_p2), 123   ;;  %vm751_vm9 = vcmask (!%p199_p2), 125952  }
   0x9   : > { %911 = vmatprep.mubr.msk.bf16.mxu0 (!%p199_p2), %vm1000_vm5, %v999_v18  ;;  %917 = vmatprep.mubr.msk.bf16.mxu1 (!%p199_p2), %vm1000_vm5, %v999_v18  ;;  %s1006_s15 = smov (!%p199_p2), 122   ;;  %s1007_s16 = smov (!%p199_p2), 121   ;;  %v299_v23 = vld [vmem:[%s1151_s3] sm:$0xff] (!%p199_p2)  ;;  %v876_v28 = vld [vmem:[%s1150_s2 + $0xc] sm:$0xf] (!%p199_p2)  ;;  %vm762_vm10 = vcmask (!%p199_p2), 7168  }
   0xa   : > { %s1008_s17 = smov (!%p199_p2), 120   ;;  %v871_v25 = vld [vmem:[%s1150_s2 + $0x4] sm:$0xf] (!%p199_p2)  ;;  %v874_v30 = vld [vmem:[%s1150_s2 + $0x8] sm:$0xf] (!%p199_p2)  ;;  %vm764_vm11 = vcmask (!%p199_p2), 15368  }
   0xb   : > { %258 = vperm.xlu1 (!%p199_p2), %985, %v249_v3   ;;  %253 = vperm.xlu0 (!%p199_p2), %984, %v249_v3   ;;  %v880_v32 = vld [vmem:[%s1150_s2 + $0x14] sm:$0xf] (!%p199_p2)  ;;  %v878_v34 = vld [vmem:[%s1150_s2 + $0x10] sm:$0xf] (!%p199_p2)  ;;  %v884_v36 = vld [vmem:[%s1150_s2 + $0x1c] sm:$0xf] (!%p199_p2) }
   0xc   : > { %v882_v37 = vld [vmem:[%s1150_s2 + $0x18] sm:$0xf] (!%p199_p2)  ;;  %v886_v39 = vld [vmem:[%s1150_s2 + $0x20] sm:$0xf] (!%p199_p2) }
   0xd   : > { %s1155_s19 = smov (!%p232_p3, %s862_s19), 1 }
   0xe   : > { %s868_s24 = sshll.u32 %s1155_s19, 2  ;;  %s867_s28 = sshll.u32 %s1155_s19, 3 }
   0xf   : > { %s239_s27 = scalar_lea.vmem %s1149_s1, %s868_s24  ;;  %s235_s6 = scalar_lea.vmem %s1148_s0, %s867_s28 }
  0x10   : > { %v274_v4 = vld [vmem:[%s239_s27] sm:$0xf]  ;;  %s247_s22 = scalar_lea.vmem %s1153_s5, %s867_s28 }
  0x11   : > { %v275_v5 = vunpack.c.l.bf16 %v274_v4  ;;  %v250_v9 = vld [vmem:[%s235_s6] sm:$0xff] }
  0x86   : > { %v284_v6 = vpop.permute.xlu1 %283  ;;  %v279_v7 = vpop.permute.xlu0 %278 }
  0x87   : > { %v281_v8 = vmul.f32 %v279_v7, %v275_v5 }
  0x89   : > { %v286_v10 = vadd.f32 %v284_v6, %v281_v8 }
  0x8a   : > { %v254_v11 = vpop.permute.xlu0 %253  ;;  %v259_v14 = vpop.permute.xlu1 %258 }
  0x8b   : > { %v287_v12 = vpack.c.bf16 %v286_v10, %v286_v10  ;;  %v256_v13 = vmul.f32 %v254_v11, %v250_v9 }
  0x8d   : > { %v289_v15 = vrot.slane %v287_v12, 4  ;;  %v261_v16 = vadd.f32 %v259_v14, %v256_v13 }
  0x8f   : > { %v262_v17 = vpack.c.bf16 %v261_v16, %v261_v16  ;;  %290 = vrot.lane.b32.xlu1 %v289_v15, %s998_s7 }
  0x91   : > { %264 = vrot.lane.b32.xlu0 %v262_v17, %s998_s7 }
 0x101   : > { %v291_v19 = vpop.permute.xlu1 %290 }
 0x102   : > { %294 = vst.msk [vmem:[#allocation2] sm:$0xf0] %vm293_vm0, %v291_v19 }
 0x103   : > { %296 = vst.msk [vmem:[#allocation2] sm:$0xf0] %vm295_vm1, %v997_v2  ;;  %v265_v20 = vpop.permute.xlu0 %264 }
 0x104   : > { %298 = vst.msk [vmem:[#allocation2] sm:$0xf0] %vm297_vm2, %v997_v2 }
 0x105   : > { %268 = vst.msk [vmem:[#allocation2] sm:$0xf] %vm267_vm3, %v265_v20 }
 0x106   : > { %270 = vst.msk [vmem:[#allocation2] sm:$0xf] %vm269_vm4, %v997_v2 }
 0x107   : > { %272 = vst.msk [vmem:[#allocation2] sm:$0xf] %vm271_vm6, %v997_v2 }
 0x10e   : > { %v301_v21 = vld [vmem:[#allocation2] sm:$0xff] }
 0x10f   : > { %305 = vrot.lane.b32.xlu0 %v301_v21, %s1001_s8  ;;  %397 = vrot.lane.b32.xlu1 %v301_v21, %s1002_s9 }
 0x110   : > { %916 = vmatpush3.bf16.msra.mxu1 %v301_v21 }
 0x111   : > { %927 = vmatprep.subr.bf16.mxu1 %v999_v18 }
 0x113   : > { %446 = vrot.lane.b32.xlu0 %v301_v21, %s1003_s12  ;;  %495 = vrot.lane.b32.xlu1 %v301_v21, %s1004_s13 }
 0x114   : > { %918 = vmatmul.mubr.msk.bf16.vlgmr.msra.gmra.mrb[0].mxu1 %vm308_vm7, %v300_v22 }
 0x115   : > { %929 = vmatprep.mubr.msk.bf16.mxu1 %vm1000_vm5, %v999_v18 }
 0x117   : > { %544 = vrot.lane.b32.xlu0 %v301_v21, %s1005_s14  ;;  %593 = vrot.lane.b32.xlu1 %v301_v21, %s1006_s15 }
 0x11b   : > { %642 = vrot.lane.b32.xlu0 %v301_v21, %s1007_s16  ;;  %691 = vrot.lane.b32.xlu1 %v301_v21, %s1008_s17  ;;  %s243_s17 = scalar_lea.vmem %s1152_s4, %s868_s24 }
 0x11f   : > { %740 = vperm.xlu0 %984, %v299_v23  }
 0x181   : > { %v306_v24 = vpop.permute.xlu0 %305  ;;  %v398_v26 = vpop.permute.xlu1 %397 }
 0x182   : > { %910 = vmatpush3.bf16.msra.mxu0 %v306_v24 }
 0x183   : > { %921 = vmatprep.subr.bf16.mxu0 %v999_v18 }
 0x185   : > { %912 = vmatmul.mubr.msk.bf16.vlgmr.msra.gmra.mrb[0].mxu0 %vm308_vm7, %v871_v25  ;;  %v447_v27 = vpop.permute.xlu0 %446  ;;  %v496_v31 = vpop.permute.xlu1 %495 }
 0x186   : > { %922 = vmatpush3.bf16.msra.mxu0 %v398_v26  ;;  %923 = vmatprep.mubr.msk.bf16.mxu0 %vm1000_vm5, %v999_v18 }
 0x187   : > { %928 = vmatpush3.bf16.msra.mxu1 %v447_v27  ;;  %933 = vmatprep.subr.bf16.mxu0 %v999_v18 }
 0x188   : > { %939 = vmatprep.subr.bf16.mxu1 %v999_v18 }
 0x189   : > { %v545_v29 = vpop.permute.xlu0 %544  ;;  %v594_v35 = vpop.permute.xlu1 %593 }
 0x18a   : > { %930 = vmatmul.mubr.msk.bf16.vlgmr.msra.gmra.mrb[4].mxu1 %vm308_vm7, %v876_v28 }
 0x18b   : > { %940 = vmatpush3.bf16.msra.mxu1 %v545_v29  ;;  %941 = vmatprep.mubr.msk.bf16.mxu1 %vm1000_vm5, %v999_v18 }
 0x18c   : > { %951 = vmatprep.subr.bf16.mxu1 %v999_v18 }
 0x18d   : > { %924 = vmatmul.mubr.msk.bf16.vlgmr.msra.gmra.mrb[4].mxu0 %vm308_vm7, %v874_v30  ;;  %v643_v33 = vpop.permute.xlu0 %642  ;;  %v692_v38 = vpop.permute.xlu1 %691 }
 0x18e   : > { %934 = vmatpush3.bf16.msra.mxu0 %v496_v31  ;;  %935 = vmatprep.mubr.msk.bf16.mxu0 %vm1000_vm5, %v999_v18 }
 0x18f   : > { %945 = vmatprep.subr.bf16.mxu0 %v999_v18 }
 0x192   : > { %942 = vmatmul.mubr.msk.bf16.vlgmr.msra.gmra.mrb[8].mxu1 %vm308_vm7, %v880_v32 }
 0x193   : > { %952 = vmatpush3.bf16.msra.mxu1 %v643_v33  ;;  %953 = vmatprep.mubr.msk.bf16.mxu1 %vm1000_vm5, %v999_v18 }
 0x195   : > { %936 = vmatmul.mubr.msk.bf16.vlgmr.msra.gmra.mrb[8].mxu0 %vm308_vm7, %v878_v34 }
 0x196   : > { %946 = vmatpush3.bf16.msra.mxu0 %v594_v35  ;;  %947 = vmatprep.mubr.msk.bf16.mxu0 %vm1000_vm5, %v999_v18 }
 0x197   : > { %957 = vmatprep.subr.bf16.mxu0 %v999_v18 }
 0x19a   : > { %954 = vmatmul.mubr.msk.bf16.vlgmr.msra.gmra.mrb[12].mxu1 %vm308_vm7, %v884_v36 }
 0x19d   : > { %948 = vmatmul.mubr.msk.bf16.vlgmr.msra.gmra.mrb[12].mxu0 %vm308_vm7, %v882_v37 }
 0x19e   : > { %958 = vmatpush3.bf16.msra.mxu0 %v692_v38  ;;  %959 = vmatprep.mubr.msk.bf16.mxu0 %vm1000_vm5, %v999_v18  ;;  %v741_v18 = vpop.permute.xlu0 %740 }
 0x1a5   : > { %960 = vmatmul.mubr.msk.bf16.vlgmr.msra.gmra.mrb[16].mxu0 %vm308_vm7, %v886_v39 }
 0x1e7   : > { %v389_v40 = vpop.f32.mrb[0].mxu1 }
 0x1e8   : > { %v919_v41 = vpop.f32.mrb[1].mxu1 }
 0x1e9   : > { %v392_v42 = vpop.f32.mrb[2].mxu1 }
 0x1ea   : > { %v920_v43 = vpop.f32.mrb[3].mxu1 }
 0x258   : > { %v346_v44 = vpop.f32.mrb[0].mxu0 }
 0x259   : > { %v913_v45 = vpop.f32.mrb[1].mxu0  ;;  %v390_v46 = vadd.f32 %v389_v40, %v346_v44 }
 0x25a   : > { %v349_v47 = vpop.f32.mrb[2].mxu0 }
 0x25b   : > { %v914_v48 = vpop.f32.mrb[3].mxu0 }
 0x25d   : > { %v486_v49 = vpop.f32.mrb[4].mxu1 }
 0x25e   : > { %v931_v50 = vpop.f32.mrb[5].mxu1 }
 0x25f   : > { %v489_v51 = vpop.f32.mrb[6].mxu1 }
 0x260   : > { %v437_v52 = vpop.f32.mrb[4].mxu0  ;;  %v932_v53 = vpop.f32.mrb[7].mxu1 }
 0x261   : > { %v443_v54 = vadd.f32 %v437_v52, %v390_v46  ;;  %v925_v55 = vpop.f32.mrb[5].mxu0 }
 0x262   : > { %v440_v56 = vpop.f32.mrb[6].mxu0 }
 0x263   : > { %v492_v57 = vadd.f32 %v486_v49, %v443_v54  ;;  %v926_v58 = vpop.f32.mrb[7].mxu0 }
 0x265   : > { %v584_v59 = vpop.f32.mrb[8].mxu1 }
 0x266   : > { %v943_v60 = vpop.f32.mrb[9].mxu1 }
 0x267   : > { %v587_v61 = vpop.f32.mrb[10].mxu1 }
 0x268   : > { %v535_v62 = vpop.f32.mrb[8].mxu0  ;;  %v944_v63 = vpop.f32.mrb[11].mxu1 }
 0x269   : > { %v541_v0 = vadd.f32 %v535_v62, %v492_v57  ;;  %v937_v1 = vpop.f32.mrb[9].mxu0 }
 0x26a   : > { %v538_v2 = vpop.f32.mrb[10].mxu0 }
 0x26b   : > { %v590_v3 = vadd.f32 %v584_v59, %v541_v0  ;;  %v938_v4 = vpop.f32.mrb[11].mxu0 }
 0x26d   : > { %v682_v5 = vpop.f32.mrb[12].mxu1 }
 0x26e   : > { %v955_v6 = vpop.f32.mrb[13].mxu1 }
 0x26f   : > { %v685_v7 = vpop.f32.mrb[14].mxu1 }
 0x270   : > { %v633_v8 = vpop.f32.mrb[12].mxu0  ;;  %v956_v9 = vpop.f32.mrb[15].mxu1 }
 0x271   : > { %v639_v10 = vadd.f32 %v633_v8, %v590_v3  ;;  %v949_v11 = vpop.f32.mrb[13].mxu0 }
 0x272   : > { %v636_v12 = vpop.f32.mrb[14].mxu0 }
 0x273   : > { %v688_v13 = vadd.f32 %v682_v5, %v639_v10  ;;  %v950_v14 = vpop.f32.mrb[15].mxu0 }
 0x278   : > { %v731_v15 = vpop.f32.mrb[16].mxu0 }
 0x279   : > { %v737_v16 = vadd.f32 %v731_v15, %v688_v13  ;;  %v961_v17 = vpop.f32.mrb[17].mxu0 }
 0x27a   : > { %v734_v19 = vpop.f32.mrb[18].mxu0 }
 0x27b   : > { %v743_v20 = vadd.f32 %v741_v18, %v737_v16  ;;  %v962_v21 = vpop.f32.mrb[19].mxu0 }
 0x27d   : > { %v745_v22 = vmin.f32 %v743_v20, 0.0  ;;  %vm744_vm8 = vcmp.gt.f32.partialorder %v743_v20, 0.0 }
 0x27f   : > { %v746_v23 = vmul.f32 1.442695, %v745_v22 }
 0x281   : > { %986 = vpow2.f32 %v746_v23 }
 0x28b   : > { %v987_v24 = vpop.eup %986 }
 0x28c   : > { %v888_v25 = vadd.f32 -1.0, %v987_v24 }
 0x28e   : > { %v749_v26 = vsel %vm744_vm8, %v743_v20, %v888_v25 }
 0x28f   : > { %v753_v27 = vsel %vm308_vm7, %v749_v26, 0.0  ;;  %v750_v28 = vpack.c.bf16 %v749_v26, %v749_v26  ;;  %v757_v29 = vmul.f32 %v749_v26, %v749_v26 }
 0x290   : > { %754 = vadd.xlane.f32.xlu1 %v753_v27 }
 0x291   : > { %752 = vst.msk [vmem:[%s243_s17] sm:$0xf] %vm751_vm9, %v750_v28  ;;  %v758_v30 = vsel %vm308_vm7, %v757_v29, 0.0 }
 0x292   : > { %759 = vadd.xlane.f32.xlu0 %v758_v30 }
 0x31d   : > { %v755_v31 = vpop.xlane.xlu1 %754 }
 0x31e   : > { %763 = vst.msk [vmem:[%s247_s22] sm:$0xff] %vm762_vm10, %v755_v31 }
 0x31f   : > { %v760_v32 = vpop.xlane.xlu0 %759 }
 0x320   : > { %765 = vst.msk [vmem:[%s247_s22] sm:$0xff] %vm764_vm11, %v760_v32 }
 0x321 PF: > { %s16_s18 = sadd.s32 1, %s994_s18  }
 0x322   : > { %p13_p4 = scmp.ge.s32.totalorder %s16_s18, 4  }
 0x324   :  { %15 = sbr.rel (!%p13_p4) target bundleno = 1 (0x1), region = 89 }

// kernel: decoder_forward.7
= control target key start
LH: loop header
LB: loop body
LE: loop exit
PB: predicated region body
PF: predicated region fallthrough
CT: control target
= control target key end

     0   :  { %s1072_s18 = smov 0   ;;  %s1188_s0 = inlined_call_operand.vmem [shape: f32[2,4,32], index: 0, kind: input, shape index: {}]   ;;  %s1189_s1 = inlined_call_operand.vmem [shape: bf16[2,4,31], index: 1, kind: input, shape index: {}]   ;;  %s1190_s2 = inlined_call_operand.vmem [shape: bf16[9,4,8], index: 2, kind: input, shape index: {}]   ;;  %s1191_s3 = inlined_call_operand.vmem [shape: f32[12,2], index: 3, kind: input, shape index: {}]   ;;  %s1192_s4 = inlined_call_operand.vmem [shape: bf16[2,4,32], index: 4, kind: output, shape index: {0}]   ;;  %s1193_s5 = inlined_call_operand.vmem [shape: f32[2,4,2], index: 5, kind: output, shape index: {1}]  }
   0x1 LB: > { %s889_s19 = sadd.s32 4294967295, %s1027_s18   ;;  %p893_p0 = scmp.ge.s32.totalorder %s1027_s18, 1  ;;  %s1027_s18 = sphi %s1072_s18, %s16_s18  }
   0x2   : > { %p198_p1 = scmp.lt.s32.totalorder %s1027_s18, 3 }
   0x4   : > { %p199_p2 = pnand %p893_p0, %p198_p1 }
   0x5   : > { %v275_v0 = vld [vmem:[%s1191_s3 + $0x8] sm:$0xf] (!%p199_p2)  ;;  %v1029_v1 = vmov (!%p199_p2), 1   ;;  %v1030_v2 = vmov (!%p199_p2), 0   ;;  %v249_v3 = vld [vmem:[%s1191_s3 + $0x4] sm:$0xf] (!%p199_p2) }
   0x6   : > { %202 = sbr.rel (%p199_p2) target bundleno = 804 (0x324), region = 36  ;;  %1017 = vset.pattern.permute.xlu1 (!%p199_p2), %v1029_v1  ;;  %1016 = vset.pattern.permute.xlu0 (!%p199_p2), %v1030_v2  ;;  %p232_p3 = scmp.lt.s32.totalorder (!%p199_p2), %s889_s19, 1  ;;  %vm297_vm0 = vcmask (!%p199_p2), 281634   ;;  %vm299_vm1 = vcmask (!%p199_p2), 27650   ;;  %vm301_vm2 = vcmask (!%p199_p2), 322842   ;;  %vm269_vm3 = vcmask (!%p199_p2), 287776  }
   0x7   : > { %285 = vperm.xlu1 (!%p199_p2), %1017, %v275_v0   ;;  %280 = vperm.xlu0 (!%p199_p2), %1016, %v275_v0   ;;  %s1031_s7 = smov (!%p199_p2), 4   ;;  %vm271_vm4 = vcmask (!%p199_p2), 25600   ;;  %vm273_vm5 = vcmask (!%p199_p2), 320800   ;;  %v1032_v20 = vmov (!%p199_p2), 0.0   ;;  %vm1033_vm6 = vmmov (!%p199_p2), 0   ;;  %s1034_s10 = smov (!%p199_p2), 127  }
   0x8   : > { %941 = vmatprep.subr.bf16.mxu0 (!%p199_p2), %v1032_v20  ;;  %947 = vmatprep.subr.bf16.mxu1 (!%p199_p2), %v1032_v20  ;;  %vm317_vm7 = vcmask (!%p199_p2), 1043456   ;;  %vm313_vm8 = vcmask (!%p199_p2), 64512   ;;  %v304_v24 = vld [vmem:[%s1190_s2] sm:$0x3] (!%p199_p2)  ;;  %s1035_s11 = smov (!%p199_p2), 126   ;;  %s1036_s12 = smov (!%p199_p2), 125  }
   0x9   : > { %943 = vmatprep.mubr.msk.bf16.mxu0 (!%p199_p2), %vm1033_vm6, %v1032_v20  ;;  %949 = vmatprep.mubr.msk.bf16.mxu1 (!%p199_p2), %vm1033_vm6, %v1032_v20  ;;  %s1037_s13 = smov (!%p199_p2), 124   ;;  %s1038_s14 = smov (!%p199_p2), 123   ;;  %v303_v25 = vld [vmem:[%s1191_s3] sm:$0xf] (!%p199_p2)  ;;  %v906_v33 = vld [vmem:[%s1190_s2 + $0x6] sm:$0x3] (!%p199_p2) }
   0xa   : > { %s1039_s15 = smov (!%p199_p2), 122   ;;  %s1040_s16 = smov (!%p199_p2), 121   ;;  %v900_v29 = vld [vmem:[%s1190_s2 + $0x2] sm:$0x3] (!%p199_p2)  ;;  %v904_v37 = vld [vmem:[%s1190_s2 + $0x4] sm:$0x3] (!%p199_p2) }
   0xb   : > { %258 = vperm.xlu1 (!%p199_p2), %1017, %v249_v3   ;;  %253 = vperm.xlu0 (!%p199_p2), %1016, %v249_v3   ;;  %s1041_s17 = smov (!%p199_p2), 120   ;;  %v910_v40 = vld [vmem:[%s1190_s2 + $0xa] sm:$0x3] (!%p199_p2)  ;;  %v908_v43 = vld [vmem:[%s1190_s2 + $0x8] sm:$0x3] (!%p199_p2)  ;;  %vm779_vm9 = vcmask (!%p199_p2), 257024  }
   0xc   : > { %v914_v45 = vld [vmem:[%s1190_s2 + $0xe] sm:$0x3] (!%p199_p2)  ;;  %v912_v47 = vld [vmem:[%s1190_s2 + $0xc] sm:$0x3] (!%p199_p2)  ;;  %v916_v49 = vld [vmem:[%s1190_s2 + $0x10] sm:$0x3] (!%p199_p2) }
   0xd   : > { %s1195_s19 = smov (!%p232_p3, %s889_s19), 1  ;;  %vm777_vm11 = vcmask 254976   ;;  %vm789_vm12 = vcmask 3072   ;;  %vm791_vm13 = vcmask 11272  }
   0xe   : > { %s895_s24 = sshll.u32 %s1195_s19, 1  ;;  %s894_s28 = sshll.u32 %s1195_s19, 2 }
   0xf   : > { %s239_s27 = scalar_lea.vmem %s1189_s1, %s895_s24  ;;  %s235_s6 = scalar_lea.vmem %s1188_s0, %s894_s28 }
  0x10   : > { %v276_v4 = vld [vmem:[%s239_s27] sm:$0x3]  ;;  %s247_s22 = scalar_lea.vmem %s1193_s5, %s894_s28 }
  0x11   : > { %v277_v5 = vunpack.c.l.bf16 %v276_v4  ;;  %v250_v9 = vld [vmem:[%s235_s6] sm:$0xf] }
  0x86   : > { %v286_v6 = vpop.permute.xlu1 %285  ;;  %v281_v7 = vpop.permute.xlu0 %280 }
  0x87   : > { %v283_v8 = vmul.f32 %v281_v7, %v277_v5 }
  0x89   : > { %v288_v10 = vadd.f32 %v286_v6, %v283_v8 }
  0x8a   : > { %v254_v11 = vpop.permute.xlu0 %253  ;;  %v259_v14 = vpop.permute.xlu1 %258 }
  0x8b   : > { %v922_v12 = vpack.c.bf16 %v288_v10, %v288_v10  ;;  %v256_v13 = vmul.f32 %v254_v11, %v250_v9 }
  0x8d   : > { %v293_v15 = vrot.slane %v922_v12, 6  ;;  %v261_v16 = vadd.f32 %v259_v14, %v256_v13 }
  0x8f   : > { %v921_v17 = vpack.c.bf16 %v261_v16, %v261_v16  ;;  %294 = vrot.lane.b32.xlu1 %v293_v15, %s1031_s7 }
  0x91   : > { %266 = vrot.lane.b32.xlu0 %v921_v17, %s1031_s7 }
 0x101   : > { %v295_v18 = vpop.permute.xlu1 %294 }
 0x102   : > { %298 = vst.msk [vmem:[#allocation2] sm:$0xc] %vm297_vm0, %v295_v18 }
 0x103   : > { %300 = vst.msk [vmem:[#allocation2] sm:$0xc] %vm299_vm1, %v1030_v2  ;;  %v267_v19 = vpop.permute.xlu0 %266 }
 0x104   : > { %302 = vst.msk [vmem:[#allocation2] sm:$0xc] %vm301_vm2, %v1030_v2 }
 0x105   : > { %270 = vst.msk [vmem:[#allocation2] sm:$0x3] %vm269_vm3, %v267_v19 }
 0x106   : > { %272 = vst.msk [vmem:[#allocation2] sm:$0x3] %vm271_vm4, %v1030_v2 }
 0x107   : > { %274 = vst.msk [vmem:[#allocation2] sm:$0x3] %vm273_vm5, %v1030_v2 }
 0x10e   : > { %v305_v21 = vld [vmem:[#allocation2] sm:$0xf] }
 0x10f   : > { %v901_v22 = vcombine.low %v305_v21, %v305_v21  ;;  %v365_v23 = vsel %vm317_vm7, %v305_v21, 0 }
 0x110   : > { %948 = vmatpush3.bf16.msra.mxu1 %v365_v23 }
 0x111   : > { %311 = vrot.lane.b32.xlu0 %v901_v22, %s1034_s10  ;;  %409 = vrot.lane.b32.xlu1 %v901_v22, %s1035_s11 }
 0x112   : > { %959 = vmatprep.subr.bf16.mxu1 %v1032_v20 }
 0x113   : > { %950 = vmatmul.mubr.msk.bf16.vlgmr.msra.gmra.mrb[0].mxu1 %vm313_vm8, %v304_v24 }
 0x114   : > { %961 = vmatprep.mubr.msk.bf16.mxu1 %vm1033_vm6, %v1032_v20 }
 0x115   : > { %460 = vrot.lane.b32.xlu0 %v901_v22, %s1036_s12  ;;  %511 = vrot.lane.b32.xlu1 %v901_v22, %s1037_s13 }
 0x119   : > { %562 = vrot.lane.b32.xlu0 %v901_v22, %s1038_s14  ;;  %613 = vrot.lane.b32.xlu1 %v901_v22, %s1039_s15 }
 0x11d   : > { %664 = vrot.lane.b32.xlu0 %v901_v22, %s1040_s16  ;;  %715 = vrot.lane.b32.xlu1 %v901_v22, %s1041_s17  ;;  %s243_s17 = scalar_lea.vmem %s1192_s4, %s895_s24 }
 0x121   : > { %766 = vperm.xlu0 %1016, %v303_v25  }
 0x183   : > { %v312_v26 = vpop.permute.xlu0 %311  ;;  %v410_v27 = vpop.permute.xlu1 %409 }
 0x184   : > { %v319_v28 = vsel %vm317_vm7, %v312_v26, 0  ;;  %v415_v30 = vsel %vm317_vm7, %v410_v27, 0 }
 0x185   : > { %942 = vmatpush3.bf16.msra.mxu0 %v319_v28 }
 0x186   : > { %953 = vmatprep.subr.bf16.mxu0 %v1032_v20 }
 0x187   : > { %v461_v31 = vpop.permute.xlu0 %460  ;;  %v512_v34 = vpop.permute.xlu1 %511 }
 0x188   : > { %944 = vmatmul.mubr.msk.bf16.vlgmr.msra.gmra.mrb[0].mxu0 %vm313_vm8, %v900_v29  ;;  %v466_v32 = vsel %vm317_vm7, %v461_v31, 0  ;;  %v517_v38 = vsel %vm317_vm7, %v512_v34, 0 }
 0x189   : > { %954 = vmatpush3.bf16.msra.mxu0 %v415_v30  ;;  %955 = vmatprep.mubr.msk.bf16.mxu0 %vm1033_vm6, %v1032_v20 }
 0x18a   : > { %960 = vmatpush3.bf16.msra.mxu1 %v466_v32  ;;  %965 = vmatprep.subr.bf16.mxu0 %v1032_v20 }
 0x18b   : > { %v563_v35 = vpop.permute.xlu0 %562  ;;  %971 = vmatprep.subr.bf16.mxu1 %v1032_v20  ;;  %v614_v41 = vpop.permute.xlu1 %613 }
 0x18c   : > { %v568_v36 = vsel %vm317_vm7, %v563_v35, 0  ;;  %v619_v44 = vsel %vm317_vm7, %v614_v41, 0 }
 0x18d   : > { %962 = vmatmul.mubr.msk.bf16.vlgmr.msra.gmra.mrb[4].mxu1 %vm313_vm8, %v906_v33 }
 0x18e   : > { %972 = vmatpush3.bf16.msra.mxu1 %v568_v36  ;;  %973 = vmatprep.mubr.msk.bf16.mxu1 %vm1033_vm6, %v1032_v20 }
 0x18f   : > { %983 = vmatprep.subr.bf16.mxu1 %v1032_v20  ;;  %v665_v39 = vpop.permute.xlu0 %664  ;;  %v716_v46 = vpop.permute.xlu1 %715 }
 0x190   : > { %956 = vmatmul.mubr.msk.bf16.vlgmr.msra.gmra.mrb[4].mxu0 %vm313_vm8, %v904_v37  ;;  %v670_v42 = vsel %vm317_vm7, %v665_v39, 0  ;;  %v721_v48 = vsel %vm317_vm7, %v716_v46, 0 }
 0x191   : > { %966 = vmatpush3.bf16.msra.mxu0 %v517_v38  ;;  %967 = vmatprep.mubr.msk.bf16.mxu0 %vm1033_vm6, %v1032_v20 }
 0x192   : > { %977 = vmatprep.subr.bf16.mxu0 %v1032_v20 }
 0x195   : > { %974 = vmatmul.mubr.msk.bf16.vlgmr.msra.gmra.mrb[8].mxu1 %vm313_vm8, %v910_v40 }
 0x196   : > { %984 = vmatpush3.bf16.msra.mxu1 %v670_v42  ;;  %985 = vmatprep.mubr.msk.bf16.mxu1 %vm1033_vm6, %v1032_v20 }
 0x198   : > { %968 = vmatmul.mubr.msk.bf16.vlgmr.msra.gmra.mrb[8].mxu0 %vm313_vm8, %v908_v43 }
 0x199   : > { %978 = vmatpush3.bf16.msra.mxu0 %v619_v44  ;;  %979 = vmatprep.mubr.msk.bf16.mxu0 %vm1033_vm6, %v1032_v20 }
 0x19a   : > { %989 = vmatprep.subr.bf16.mxu0 %v1032_v20 }
 0x19d   : > { %986 = vmatmul.mubr.msk.bf16.vlgmr.msra.gmra.mrb[12].mxu1 %vm313_vm8, %v914_v45 }
 0x1a0   : > { %980 = vmatmul.mubr.msk.bf16.vlgmr.msra.gmra.mrb[12].mxu0 %vm313_vm8, %v912_v47  ;;  %v767_v28 = vpop.permute.xlu0 %766 }
 0x1a1   : > { %990 = vmatpush3.bf16.msra.mxu0 %v721_v48  ;;  %991 = vmatprep.mubr.msk.bf16.mxu0 %vm1033_vm6, %v1032_v20 }
 0x1a8   : > { %992 = vmatmul.mubr.msk.bf16.vlgmr.msra.gmra.mrb[16].mxu0 %vm313_vm8, %v916_v49 }
 0x1e6   : > { %v401_v50 = vpop.f32.mrb[0].mxu1 }
 0x1e7   : > { %v951_v51 = vpop.f32.mrb[1].mxu1 }
 0x1e8   : > { %v404_v52 = vpop.f32.mrb[2].mxu1 }
 0x1e9   : > { %v952_v53 = vpop.f32.mrb[3].mxu1 }
 0x25b   : > { %v355_v54 = vpop.f32.mrb[0].mxu0 }
 0x25c   : > { %v945_v55 = vpop.f32.mrb[1].mxu0  ;;  %v402_v56 = vadd.f32 %v401_v50, %v355_v54 }
 0x25d   : > { %v358_v57 = vpop.f32.mrb[2].mxu0 }
 0x25e   : > { %v946_v58 = vpop.f32.mrb[3].mxu0 }
 0x260   : > { %v502_v59 = vpop.f32.mrb[4].mxu1 }
 0x261   : > { %v963_v60 = vpop.f32.mrb[5].mxu1 }
 0x262   : > { %v505_v61 = vpop.f32.mrb[6].mxu1 }
 0x263   : > { %v451_v62 = vpop.f32.mrb[4].mxu0  ;;  %v964_v63 = vpop.f32.mrb[7].mxu1 }
 0x264   : > { %v457_v0 = vadd.f32 %v451_v62, %v402_v56  ;;  %v957_v1 = vpop.f32.mrb[5].mxu0 }
 0x265   : > { %v454_v2 = vpop.f32.mrb[6].mxu0 }
 0x266   : > { %v508_v3 = vadd.f32 %v502_v59, %v457_v0  ;;  %v958_v4 = vpop.f32.mrb[7].mxu0 }
 0x268   : > { %v604_v5 = vpop.f32.mrb[8].mxu1 }
 0x269   : > { %v975_v6 = vpop.f32.mrb[9].mxu1 }
 0x26a   : > { %v607_v7 = vpop.f32.mrb[10].mxu1 }
 0x26b   : > { %v553_v8 = vpop.f32.mrb[8].mxu0  ;;  %v976_v9 = vpop.f32.mrb[11].mxu1 }
 0x26c   : > { %v559_v10 = vadd.f32 %v553_v8, %v508_v3  ;;  %v969_v11 = vpop.f32.mrb[9].mxu0 }
 0x26d   : > { %v556_v12 = vpop.f32.mrb[10].mxu0 }
 0x26e   : > { %v610_v13 = vadd.f32 %v604_v5, %v559_v10  ;;  %v970_v14 = vpop.f32.mrb[11].mxu0 }
 0x270   : > { %v706_v15 = vpop.f32.mrb[12].mxu1 }
 0x271   : > { %v987_v16 = vpop.f32.mrb[13].mxu1 }
 0x272   : > { %v709_v17 = vpop.f32.mrb[14].mxu1 }
 0x273   : > { %v655_v18 = vpop.f32.mrb[12].mxu0  ;;  %v988_v19 = vpop.f32.mrb[15].mxu1 }
 0x274   : > { %v661_v20 = vadd.f32 %v655_v18, %v610_v13  ;;  %v981_v21 = vpop.f32.mrb[13].mxu0 }
 0x275   : > { %v658_v22 = vpop.f32.mrb[14].mxu0 }
 0x276   : > { %v712_v23 = vadd.f32 %v706_v15, %v661_v20  ;;  %v982_v24 = vpop.f32.mrb[15].mxu0 }
 0x27b   : > { %v757_v25 = vpop.f32.mrb[16].mxu0 }
 0x27c   : > { %v763_v26 = vadd.f32 %v757_v25, %v712_v23  ;;  %v993_v27 = vpop.f32.mrb[17].mxu0 }
 0x27d   : > { %v760_v29 = vpop.f32.mrb[18].mxu0 }
 0x27e   : > { %v769_v30 = vadd.f32 %v767_v28, %v763_v26  ;;  %v994_v31 = vpop.f32.mrb[19].mxu0 }
 0x280   : > { %v771_v32 = vmin.f32 %v769_v30, 0.0  ;;  %vm770_vm10 = vcmp.gt.f32.partialorder %v769_v30, 0.0 }
 0x282   : > { %v772_v33 = vmul.f32 1.442695, %v771_v32 }
 0x284   : > { %1019 = vpow2.f32 %v772_v33 }
 0x28e   : > { %v1020_v34 = vpop.eup %1019 }
 0x28f   : > { %v918_v35 = vadd.f32 -1.0, %v1020_v34 }
 0x291   : > { %v775_v36 = vsel %vm770_vm10, %v769_v30, %v918_v35 }
 0x292   : > { %v780_v37 = vsel %vm779_vm9, %v775_v36, 0.0  ;;  %v776_v38 = vpack.c.bf16 %v775_v36, %v775_v36  ;;  %v784_v39 = vmul.f32 %v775_v36, %v775_v36 }
 0x293   : > { %781 = vadd.xlane.f32.xlu1 %v780_v37 }
 0x294   : > { %778 = vst.msk [vmem:[%s243_s17] sm:$0x3] %vm777_vm11, %v776_v38  ;;  %v785_v40 = vsel %vm779_vm9, %v784_v39, 0.0 }
 0x295   : > { %786 = vadd.xlane.f32.xlu0 %v785_v40 }
 0x320   : > { %v782_v41 = vpop.xlane.xlu1 %781 }
 0x321   : > { %790 = vst.msk [vmem:[%s247_s22] sm:$0xf] %vm789_vm12, %v782_v41 }
 0x322   : > { %v787_v42 = vpop.xlane.xlu0 %786 }
 0x323   : > { %792 = vst.msk [vmem:[%s247_s22] sm:$0xf] %vm791_vm13, %v787_v42 }
 0x324 PF: > { %s16_s18 = sadd.s32 1, %s1027_s18  }
 0x325   : > { %p13_p4 = scmp.ge.s32.totalorder %s16_s18, 4  }
 0x327   :  { %15 = sbr.rel (!%p13_p4) target bundleno = 1 (0x1), region = 89 }

</bundles_post_ra>
